<compile_context>
chip_gen: v6e
topology: v6e:2x2x1
jax: 0.10.0
libtpu: 0.0.40
codegen_flags: <defaults>
</compile_context>

<pallas_src>
import jax
import jax.numpy as jnp
from jax import lax
from jax.experimental import pallas as pl
from jax.experimental.pallas import tpu as pltpu


def _round_up(x, m):
    return ((x + m - 1) // m) * m


def _choose_tile(dim, cap, align):
    """Largest multiple of `align` <= cap that divides round_up(dim, align).

    Returns (tile, padded_dim). Because the tile divides the aligned dim,
    padding is always the minimal (<align) amount — often zero.
    """
    dim_aligned = _round_up(dim, align)
    t = max(align, (min(cap, dim_aligned) // align) * align)
    while t > align and dim_aligned % t != 0:
        t -= align
    return t, dim_aligned


def _linear_kernel(x_ref, w_ref, b_ref, o_ref, acc_ref):
    # x_ref: (tm, tk), w_ref: (tn, tk), b_ref: (1, tn), o_ref: (tm, tn)
    k = pl.program_id(2)

    @pl.when(k == 0)
    def _init():
        # Fold the bias into the accumulator init: epilogue is just cast+store.
        acc_ref[...] = jnp.broadcast_to(
            b_ref[...].astype(jnp.float32), acc_ref.shape)

    # Contract on the shared K axis of both operands: (tm,tk) . (tn,tk)^T.
    # The MXU takes the transposed-RHS contraction natively (no per-k vxpose
    # observed); if it ever did, pre-transpose the static weight once in the
    # wrapper instead.
    acc_ref[...] += lax.dot_general(
        x_ref[...], w_ref[...],
        dimension_numbers=(((1,), (1,)), ((), ())),
        preferred_element_type=jnp.float32)

    @pl.when(k == pl.num_programs(2) - 1)
    def _writeback():
        o_ref[...] = acc_ref[...].astype(o_ref.dtype)


def classifier_head(x, weight, bias, *, bit_exact=False, tm=None, tn=None, tk=None):
    """y = x @ weight.T + bias.  x: (B, D); weight: (O, D) torch layout; bias: (O,)."""
    B, D = x.shape
    O, D_w = weight.shape
    assert D_w == D, (weight.shape, x.shape)
    out_dtype = x.dtype

    # ---- Small-problem fallback (e.g. the 3-class torch default) ----------
    if O < 128 or D < 128 or B * O * D < (1 << 20):
        return (jnp.dot(x, weight.T) + bias).astype(out_dtype)

    compute_dtype = jnp.float32 if bit_exact else jnp.bfloat16
    in_bytes = jnp.dtype(compute_dtype).itemsize
    out_bytes = jnp.dtype(out_dtype).itemsize
    tm_arg, tn_arg, tk_arg = tm, tn, tk

    # ---- Tile selection ----------------------------------------------------
    # Big tiles (fewer grid steps, less weight re-streaming), chosen as
    # divisors of the aligned dims so HBM-side padding is minimal/zero.
    m_align = 8 if bit_exact else 16          # bf16 sublane packing
    tk_cap = 512 if bit_exact else 1024
    tm, M_pad = _choose_tile(B, tm_arg or 512, m_align)
    tn, N_pad = _choose_tile(O, tn_arg or 512, 128)
    tk, K_pad = _choose_tile(D, tk_arg or tk_cap, 128)

    # v7x megacore: ensure at least one parallel grid axis has >= 2 blocks.
    if tn_arg is None and M_pad // tm == 1 and N_pad // tn == 1 and N_pad >= 256:
        tn, _ = _choose_tile(N_pad, N_pad // 2, 128)

    # ---- Cast (bf16 by default) and pad only when actually needed ---------
    x_c = x.astype(compute_dtype)
    w_c = weight.astype(compute_dtype)
    if (M_pad, K_pad) != (B, D):
        x_c = jnp.pad(x_c, ((0, M_pad - B), (0, K_pad - D)))
    if (N_pad, K_pad) != (O, D):
        # Static classifier weight: with divisor-based tk this pad is usually
        # skipped; if not, jit/cache the padded weight across calls.
        w_c = jnp.pad(w_c, ((0, N_pad - O), (0, K_pad - D)))
    b_c = bias.astype(jnp.float32)
    if N_pad != O:
        b_c = jnp.pad(b_c, (0, N_pad - O))
    b_c = b_c.reshape(1, N_pad)

    grid = (M_pad // tm, N_pad // tn, K_pad // tk)
    n_i, n_j, _ = grid

    # Real traffic: x streamed once per N block, weight once per M block.
    cost = pl.CostEstimate(
        flops=2 * M_pad * N_pad * K_pad,
        transcendentals=0,
        bytes_accessed=(M_pad * K_pad * in_bytes * n_j
                        + N_pad * K_pad * in_bytes * n_i
                        + N_pad * 4 * n_i
                        + M_pad * N_pad * out_bytes),
    )

    # Double-buffered footprint + f32 accumulator; cap below v7x's 64 MiB VMEM.
    vmem_bytes = (2 * tm * tk * in_bytes        # x tiles
                  + 2 * tn * tk * in_bytes      # weight tiles
                  + 2 * tn * 4                  # bias row
                  + tm * tn * 4                 # f32 accumulator scratch
                  + 2 * tm * tn * out_bytes)    # output tiles
    vmem_limit = int(min(48 * 1024 * 1024, max(16 * 1024 * 1024, 2 * vmem_bytes)))

    out_padded = pl.pallas_call(
        _linear_kernel,
        out_shape=jax.ShapeDtypeStruct((M_pad, N_pad), out_dtype),
        grid_spec=pltpu.PrefetchScalarGridSpec(
            num_scalar_prefetch=0,
            grid=grid,
            in_specs=[
                pl.BlockSpec((tm, tk), lambda i, j, k: (i, k)),   # x
                pl.BlockSpec((tn, tk), lambda i, j, k: (j, k)),   # weight (O, D)
                pl.BlockSpec((1, tn), lambda i, j, k: (0, j)),    # bias row
            ],
            out_specs=pl.BlockSpec((tm, tn), lambda i, j, k: (i, j)),
            scratch_shapes=[pltpu.VMEM((tm, tn), jnp.float32)],
        ),
        compiler_params=pltpu.CompilerParams(
            dimension_semantics=("parallel", "parallel", "arbitrary"),
            vmem_limit_bytes=vmem_limit,
        ),
        cost_estimate=cost,
    )(x_c, w_c, b_c)

    if (M_pad, N_pad) != (B, O):
        out_padded = out_padded[:B, :O]
    return out_padded


if __name__ == "__main__":
    key = jax.random.PRNGKey(0)
    keys = jax.random.split(key, 9)

    # 1) Toy shape matching the torch module spec (output_dim=3): takes the
    #    plain-JAX fallback path.
    B0, D0, O0 = 8, 32, 3
    x0 = jax.random.normal(keys[0], (B0, D0), dtype=jnp.float32)
    w0 = jax.random.normal(keys[1], (O0, D0), dtype=jnp.float32)
    b0 = jax.random.normal(keys[2], (O0,), dtype=jnp.float32)
    out0 = jax.block_until_ready(classifier_head(x0, w0, b0))
    ref0 = x0 @ w0.T + b0
    assert out0.shape == (B0, O0)
    assert jnp.allclose(out0, ref0, atol=1e-5, rtol=1e-5), "fallback path mismatch"

    # 2) Pallas path (default bf16 operands + f32 accumulator), aligned shapes.
    B1, D1, O1 = 256, 2048, 384
    x1 = jax.random.normal(keys[3], (B1, D1), dtype=jnp.float32)
    w1 = jax.random.normal(keys[4], (O1, D1), dtype=jnp.float32)
    b1 = jax.random.normal(keys[5], (O1,), dtype=jnp.float32)
    out1 = jax.block_until_ready(classifier_head(x1, w1, b1))
    ref1 = jnp.dot(x1.astype(jnp.bfloat16).astype(jnp.float32),
                   w1.astype(jnp.bfloat16).astype(jnp.float32).T,
                   precision=lax.Precision.HIGHEST) + b1
    assert out1.shape == (B1, O1)
    assert jnp.allclose(out1, ref1, atol=1e-2, rtol=1e-2), "bf16 pallas path mismatch"

    # 3) f32 ("bit-exact") Pallas path, same shapes (exercises multi-k accumulation).
    out2 = jax.block_until_ready(classifier_head(x1, w1, b1, bit_exact=True))
    ref2 = jnp.dot(x1, w1.T, precision=lax.Precision.HIGHEST) + b1
    assert jnp.allclose(out2, ref2, atol=1e-2, rtol=1e-3), "f32 pallas path mismatch"

    # 4) Pallas path with non-aligned shapes (exercises pad + slice-back).
    B2, D2, O2 = 100, 300, 200
    x2 = jax.random.normal(keys[6], (B2, D2), dtype=jnp.float32)
    w2 = jax.random.normal(keys[7], (O2, D2), dtype=jnp.float32)
    b2 = jax.random.normal(keys[8], (O2,), dtype=jnp.float32)
    out3 = jax.block_until_ready(classifier_head(x2, w2, b2))
    ref3 = jnp.dot(x2.astype(jnp.bfloat16).astype(jnp.float32),
                   w2.astype(jnp.bfloat16).astype(jnp.float32).T,
                   precision=lax.Precision.HIGHEST) + b2
    assert out3.shape == (B2, O2)
    assert jnp.allclose(out3, ref3, atol=1e-2, rtol=1e-2), "padded pallas path mismatch"

    print("KERNEL_OK")
</pallas_src>

<mosaic_0001>
module attributes {stable_mosaic.version = 11 : i64} {
  func.func @_linear_kernel(%arg0: i32, %arg1: i32, %arg2: i32, %arg3: memref<256x1024xbf16, #tpu.memory_space<vmem>>, %arg4: memref<128x1024xbf16, #tpu.memory_space<vmem>>, %arg5: memref<1x128xf32, #tpu.memory_space<vmem>>, %arg6: memref<256x128xf32, #tpu.memory_space<vmem>>, %arg7: memref<256x128xf32, #tpu.memory_space<vmem>>) attributes {dimension_semantics = [#tpu.dimension_semantics<parallel>, #tpu.dimension_semantics<parallel>, #tpu.dimension_semantics<arbitrary>], iteration_bounds = array<i64: 1, 3, 2>, scalar_prefetch = 0 : i64, scratch_operands = 1 : i64, tpu.core_type = #tpu.core_type<tc>, window_params = [{transform_indices = @transform_0, window_bounds = array<i64: 256, 1024>}, {transform_indices = @transform_1, window_bounds = array<i64: 128, 1024>}, {transform_indices = @transform_2, window_bounds = array<i64: 1, 128>}, {transform_indices = @transform_3, window_bounds = array<i64: 256, 128>}]} {
    %c0_i32 = arith.constant 0 : i32
    %0 = arith.cmpi eq, %arg2, %c0_i32 : i32
    %1 = arith.extui %0 : i1 to i32
    %c0_i32_0 = arith.constant 0 : i32
    %2 = arith.cmpi ne, %1, %c0_i32_0 : i32
    scf.if %2 {
      %c0_9 = arith.constant 0 : index
      %c0_10 = arith.constant 0 : index
      %12 = vector.load %arg5[%c0_9, %c0_10] : memref<1x128xf32, #tpu.memory_space<vmem>>, vector<1x128xf32>
      %13 = vector.shape_cast %12 : vector<1x128xf32> to vector<1x128xf32>
      %14 = vector.broadcast %13 : vector<1x128xf32> to vector<256x128xf32>
      %c0_11 = arith.constant 0 : index
      %c0_12 = arith.constant 0 : index
      %15 = vector.load %arg7[%c0_11, %c0_12] : memref<256x128xf32, #tpu.memory_space<vmem>>, vector<256x128xf32>
      tpu.vector_store %arg7[%c0_11, %c0_12], %14 {strides = array<i32>} : memref<256x128xf32, #tpu.memory_space<vmem>>, vector<256x128xf32>,
    } else {
    }
    %c0 = arith.constant 0 : index
    %c0_1 = arith.constant 0 : index
    %3 = vector.load %arg7[%c0, %c0_1] : memref<256x128xf32, #tpu.memory_space<vmem>>, vector<256x128xf32>
    %c0_2 = arith.constant 0 : index
    %c0_3 = arith.constant 0 : index
    %4 = vector.load %arg3[%c0_2, %c0_3] : memref<256x1024xbf16, #tpu.memory_space<vmem>>, vector<256x1024xbf16>
    %c0_4 = arith.constant 0 : index
    %c0_5 = arith.constant 0 : index
    %5 = vector.load %arg4[%c0_4, %c0_5] : memref<128x1024xbf16, #tpu.memory_space<vmem>>, vector<128x1024xbf16>
    %cst = arith.constant dense<0.000000e+00> : vector<256x128xf32>
    %6 = tpu.matmul %4, %5, %cst {dimension_numbers = #tpu.dot_dimension_numbers<[1], [1], [0], [0], [0, 0, 1, 0], [], []>} : vector<256x1024xbf16>, vector<128x1024xbf16>, vector<256x128xf32> -> vector<256x128xf32>
    %7 = arith.addf %3, %6 : vector<256x128xf32>
    %c0_6 = arith.constant 0 : index
    %c0_7 = arith.constant 0 : index
    %8 = vector.load %arg7[%c0_6, %c0_7] : memref<256x128xf32, #tpu.memory_space<vmem>>, vector<256x128xf32>
    tpu.vector_store %arg7[%c0_6, %c0_7], %7 {strides = array<i32>} : memref<256x128xf32, #tpu.memory_space<vmem>>, vector<256x128xf32>,
    %c1_i32 = arith.constant 1 : i32
    %9 = arith.cmpi eq, %arg2, %c1_i32 : i32
    %10 = arith.extui %9 : i1 to i32
    %c0_i32_8 = arith.constant 0 : i32
    %11 = arith.cmpi ne, %10, %c0_i32_8 : i32
    scf.if %11 {
      %c0_9 = arith.constant 0 : index
      %c0_10 = arith.constant 0 : index
      %12 = vector.load %arg7[%c0_9, %c0_10] : memref<256x128xf32, #tpu.memory_space<vmem>>, vector<256x128xf32>
      %c0_11 = arith.constant 0 : index
      %c0_12 = arith.constant 0 : index
      %13 = vector.load %arg6[%c0_11, %c0_12] : memref<256x128xf32, #tpu.memory_space<vmem>>, vector<256x128xf32>
      tpu.vector_store %arg6[%c0_11, %c0_12], %12 {strides = array<i32>} : memref<256x128xf32, #tpu.memory_space<vmem>>, vector<256x128xf32>,
    } else {
    }
    return
  }
  func.func @transform_0(%arg0: i32, %arg1: i32, %arg2: i32) -> (i32, i32) {
    %c0_i32 = arith.constant 0 : i32
    return %arg0, %arg2 : i32, i32
  }
  func.func @transform_1(%arg0: i32, %arg1: i32, %arg2: i32) -> (i32, i32) {
    %c0_i32 = arith.constant 0 : i32
    return %arg1, %arg2 : i32, i32
  }
  func.func @transform_2(%arg0: i32, %arg1: i32, %arg2: i32) -> (i32, i32) {
    %c0_i32 = arith.constant 0 : i32
    %c0_i32_0 = arith.constant 0 : i32
    return %c0_i32, %arg1 : i32, i32
  }
  func.func @transform_3(%arg0: i32, %arg1: i32, %arg2: i32) -> (i32, i32) {
    %c0_i32 = arith.constant 0 : i32
    return %arg0, %arg1 : i32, i32
  }
}

</mosaic_0001>

<bundles_post_ra>
// kernel: tpu_custom_call.1
= control target key start
LH: loop header
LB: loop body
LE: loop exit
PB: predicated region body
PF: predicated region fallthrough
CT: control target
= control target key end

     0   :  { %s3789_s0 = inlined_call_operand.hbm [shape: bf16[256,2048], index: 0, kind: input, shape index: {}]   ;;  %s3790_s1 = inlined_call_operand.hbm [shape: bf16[384,2048], index: 1, kind: input, shape index: {}]   ;;  %s3791_s2 = inlined_call_operand.hbm [shape: f32[1,384], index: 2, kind: input, shape index: {}]   ;;  %s3792_s3 = inlined_call_operand.hbm [shape: f32[256,384], index: 3, kind: output, shape index: {}]  }
   0x1   :  { %3804 = sst [smem:[#allocation21_spill]] %s3789_s0 }
   0x2   :  { %3805 = sst [smem:[#allocation22_spill]] %s3790_s1 }
   0x3   :  { %3806 = sst [smem:[#allocation23_spill]] %s3792_s3 }
   0x4   :  { %8 = vsyncpa [#allocation4], 0 }
   0x5   :  { %10 = vsyncpa [#allocation4 + $0x1], 0 }
   0x6   :  { %11 = vsyncpa [#allocation7], 0 }
   0x7   :  { %13 = vsyncpa [#allocation7 + $0x1], 0 }
   0x8   :  { %14 = vsyncpa [#allocation5], 0 }
   0x9   :  { %16 = vsyncpa [#allocation5 + $0x1], 0  ;;  %s3079_s12 = smov 0   ;;  %s3081_s13 = smov 0  }
   0xa   :  { %s3083_s14 = smov 0   ;;  %s3085_s15 = smov 0  }
   0xb   :  { %s3087_s16 = smov 0   ;;  %s3089_s17 = smov 0  }
   0xc   :  { %s3091_s18 = smov 0   ;;  %s3093_s19 = smov 0  }
   0xd   :  { %s3095_s20 = smov 0   ;;  %s3097_s21 = smov 0  }
   0xe   :  { %s3099_s22 = smov 0   ;;  %s3101_s23 = smov 0  }
   0xf   :  { %s3103_s24 = smov 0   ;;  %s3105_s25 = smov 0  }
  0x10 LB: > { %3807 = sst [smem:[#allocation14_spill]] %s3031_s21  ;;  %s34_s26 = sadd.s32 1, %s3039_s23  ;;  %s3047_s25 = sphi %s3105_s25, %s22_s25   ;;  %s3043_s24 = sphi %s3103_s24, %s3849_s24   ;;  %s3039_s23 = sphi %s3101_s23, %s3848_s23   ;;  %s3035_s22 = sphi %s3099_s22, %s3860_s22   ;;  %s3031_s21 = sphi %s3097_s21, %s3846_s21   ;;  %s3027_s20 = sphi %s3095_s20, %s3859_s20   ;;  %s3023_s19 = sphi %s3093_s19, %s3858_s19   ;;  %s3019_s18 = sphi %s3091_s18, %s3857_s18   ;;  %s3015_s17 = sphi %s3089_s17, %s3856_s17   ;;  %s3011_s16 = sphi %s3087_s16, %s3855_s16   ;;  %s3007_s15 = sphi %s3085_s15, %s3854_s15   ;;  %s3003_s14 = sphi %s3083_s14, %s3853_s14   ;;  %s2999_s13 = sphi %s3081_s13, %s3852_s13   ;;  %s2995_s12 = sphi %s3079_s12, %s3851_s12  }
  0x11   : > { %3808 = sst [smem:[#allocation15_spill]] %s3035_s22  ;;  %p3151_p0 = scmp.ge.s32.totalorder %s34_s26, 2 }
  0x12   : > { %3809 = sst [smem:[#allocation16_spill]] %s3039_s23  ;;  %p58_p1 = scmp.eq.s32.totalorder %s3047_s25, 0 }
  0x13   : > { %3810 = sst [smem:[#allocation17_spill]] %s3043_s24  ;;  %p85_p2 = scmp.ne.s32.totalorder %s3015_s17, %s3011_s16 }
  0x14   : > { %s3862_s26 = smov (%p3151_p0, %s34_s26), 0  ;;  %p3795_p6 = scmp.lt.s32.totalorder %s3047_s25, 6 }
  0x15   : > { %3812 = sst [smem:[#allocation18_spill]] %s3862_s26  ;;  %p3165_p3 = por %p85_p2, %p58_p1 }
  0x16   : > { %s3173_s4 = ssub.s32 %s3039_s23, %s3862_s26  ;;  %s193_s5 = sand.u32 1, %s3047_s25  }
  0x17   : > { %p48_p5 = scmp.eq.s32.totalorder %s3173_s4, 0  ;;  %s195_s6 = sand.u32 1, %s3015_s17  }
  0x18   : > { %s2458_s7 = sshll.u32 %s195_s6, 9  ;;  %s2460_s8 = sshll.u32 %s3039_s23, 3 }
  0x19   : > { %s2668_s9 = sshll.u32 %s3043_s24, 8  ;;  %s197_s11 = scalar_lea.vmem [#allocation6], %s2458_s7 }
  0x1a   : > { %s204_s10 = sadd.s32 %s2668_s9, %s2460_s8  ;;  %s207_s29 = sshll.u32 %s197_s11, 4  ;;  %s208_s29 = int_to_ptr.vmem [resolvable:$true] %s207_s29 }
  0x1b   : > { %s2462_s27 = sshll.u32 %s204_s10, 6  ;;  %s3814_s1 = sld [smem:[#allocation22_spill]] }
  0x1c   : > { %p3188_p7 = pnand %p3795_p6, %p3165_p3  ;;  %p2464_p8 = scmp.ge.s32.totalorder %s3047_s25, 1 }
  0x1d   : > { %p232_p9 = scmp.lt.s32.totalorder %s3047_s25, 7  ;;  %s3194_s6 = scalar_lea.sflag [#allocation7], %s193_s5 }
  0x1e   : > { %p2813_p10 = pneg %p3188_p7  ;;  %s2824_s7 = scalar_lea.vmem %s208_s29, 8192 }
  0x1f   : > { %p2825_p11 = scmp.ne.s32.totalorder %s208_s29, %s2824_s7  ;;  %s3049_s8 = smov [#allocation6]  }
  0x20   : > { %s2829_s3 = sshll.u32 %s3049_s8, 4  ;;  %s2830_s3 = int_to_ptr.vmem [resolvable:$false] %s2829_s3 }
  0x21   : > { %s206_s21 = scalar_lea.hbm %s3814_s1, %s2462_s27  ;;  %p2827_p12 = pnand %p2825_p11, %p2813_p10 }
  0x22   : > { %s2831_s22 = scalar_lea.vmem %s2830_s3, 16384  ;;  %p2832_p2 = scmp.lt.s32.totalorder %s208_s29, %s2830_s3 }
  0x23   : > { %p2828_p13 = pneg %p2827_p12  ;;  %p2833_p3 = scmp.lt.s32.totalorder %s2831_s22, %s2824_s7 }
  0x25   : > { %p2834_p4 = por %p2833_p3, %p2832_p2 }
  0x27   : > { %p2835_p6 = pnand %p2834_p4, %p2828_p13 }
  0x29   : > { %2838 = shalt.err (!%p2835_p6)
}
  0x2a   : > { %s3796_s27 = smov 1024   ;;  %s3797_s30 = smov 512  }
  0x2b   : > { %s3798_s5 = smov 32   ;;  %p3208_p4 = pnand %p2464_p8, %p232_p9 }
  0x2c   : > { %2683 = dma.hbm_to_vmem [thread:$0]  (!%p3188_p7), %s206_s21, 8192, %s208_s29, %s3194_s6, %s3796_s27, %s3797_s30, %s3798_s5  }
  0x2d   : > { %s50_s10 = sadd.s32 1, %s3027_s20  ;;  %p57_p6 = scmp.ne.s32.totalorder %s3027_s20, %s3023_s19 }
  0x2e   : > { %s3218_s11 = scalar_select %p48_p5, %s3027_s20, %s50_s10  }
  0x2f   : > { %p59_p10 = por %p58_p1, %p57_p6  ;;  %p63_p11 = scmp.ne.s32.totalorder %s3023_s19, %s3019_s18 }
  0x30   : > { %3817 = sst [smem:[#allocation19_spill]] %s3218_s11  ;;  %s169_s7 = sand.u32 1, %s3027_s20  }
  0x31   : > { %s2667_s26 = sshll.u32 %s3039_s23, 9  ;;  %s2455_s8 = sshll.u32 %s169_s7, 10 }
  0x32   : > { %s3818_s0 = sld [smem:[#allocation21_spill]]  ;;  %s173_s29 = scalar_lea.vmem [#allocation3], %s2455_s8 }
  0x33   : > { %s183_s27 = sshll.u32 %s173_s29, 4  ;;  %p3819_p7 = scmp.lt.s32.totalorder %s3047_s25, 6  ;;  %s184_s27 = int_to_ptr.vmem [resolvable:$true] %s183_s27 }
  0x34   : > { %s170_s10 = scalar_lea.sflag [#allocation4], %s169_s7  ;;  %s2852_s5 = scalar_lea.vmem %s184_s27, 16384 }
  0x35   : > { %p3231_p8 = pnand %p3819_p7, %p59_p10  ;;  %p2853_p9 = scmp.ne.s32.totalorder %s184_s27, %s2852_s5 }
  0x36   : > { %s3053_s1 = smov [#allocation3]  }
  0x37   : > { %p2841_p5 = pneg %p3231_p8  ;;  %s2857_s23 = sshll.u32 %s3053_s1, 4  ;;  %s2858_s23 = int_to_ptr.vmem [resolvable:$false] %s2857_s23 }
  0x38   : > { %s182_s21 = scalar_lea.hbm %s3818_s0, %s2667_s26  ;;  %s2859_s26 = scalar_lea.vmem %s2858_s23, 32768 }
  0x39   : > { %p2855_p12 = pnand %p2853_p9, %p2841_p5  ;;  %p2860_p2 = scmp.lt.s32.totalorder %s184_s27, %s2858_s23 }
  0x3a   : > { %p2861_p3 = scmp.lt.s32.totalorder %s2859_s26, %s2852_s5 }
  0x3b   : > { %p2856_p13 = pneg %p2855_p12 }
  0x3c   : > { %p2862_p6 = por %p2861_p3, %p2860_p2 }
  0x3e   : > { %p2863_p10 = pnand %p2862_p6, %p2856_p13 }
  0x40   : > { %2866 = shalt.err (!%p2863_p10)
}
  0x41   : > { %s3821_s8 = smov 32   ;;  %s3822_s3 = smov 512  }
  0x42   : > { %s3823_s7 = smov 1024   ;;  %s3243_s1 = sadd.s32 4294967295, %s3047_s25  }
  0x43   : > { %2680 = dma.hbm_to_vmem [thread:$0]  (!%p3231_p8), %s182_s21, 16384, %s184_s27, %s170_s10, %s3823_s7, %s3822_s3, %s3821_s8  }
  0x44   : > { %s2452_s23 = sadd.s32 4294967294, %s3047_s25   ;;  %s3824_s30 = sadd.s32 1, %s3043_s24 }
  0x45   : > { %s3864_s30 = smov (!%p3151_p0, %s3824_s30), %s3043_s24  ;;  %p64_p7 = scmp.eq.s32.totalorder %s3243_s1, 0 }
  0x46   : > { %s104_s5 = sadd.s32 1, %s3003_s14  ;;  %p39_p8 = scmp.ge.s32.totalorder %s3864_s30, 3 }
  0x47   : > { %p111_p5 = scmp.ne.s32.totalorder %s3003_s14, %s2999_s13  ;;  %p3260_p9 = por %p64_p7, %p63_p11 }
  0x48   : > { %p3826_p12 = scmp.ne.s32.totalorder %s3011_s16, %s3007_s15  ;;  %s3866_s30 = smov (%p39_p8, %s3864_s30), 0 }
  0x49   : > { %3828 = sst [smem:[#allocation20_spill]] %s3866_s30  ;;  %p3280_p13 = por %p111_p5, %p58_p1 }
  0x4a   : > { %p3269_p0 = por %p3826_p12, %p64_p7  ;;  %p117_p11 = scmp.ne.s32.totalorder %s2999_s13, %s2995_s12 }
  0x4b   : > { %s73_s22 = ssub.s32 %s3043_s24, %s3866_s30  ;;  %p143_p2 = scmp.eq.s32.totalorder %s3243_s1, 5 }
  0x4c   : > { %s75_s15 = sor.u32 %s73_s22, %s3173_s4  ;;  %p102_p3 = scmp.eq.s32.totalorder %s73_s22, 0 }
  0x4d   : > { %p76_p6 = scmp.eq.s32.totalorder %s75_s15, 0  ;;  %p3295_p10 = por %p117_p11, %p64_p7 }
  0x4e   : > { %s3300_s29 = scalar_select %p102_p3, %s3003_s14, %s104_s5  }
  0x4f   : > { %s3830_s21 = scalar_select %p3295_p10, 1, 0 }
  0x50   : > { %s3831_s10 = sadd.s32 1, %s3015_s17  ;;  %p3310_p1 = por %p143_p2, %p111_p5 }
  0x51   : > { %s3305_s26 = scalar_select %p76_p6, %s3015_s17, %s3831_s10  }
  0x52   : > { %s3832_s8 = scalar_select %p3310_p1, 1, 0 }
  0x53   : > { %p149_p8 = scmp.eq.s32.totalorder %s2452_s23, 5  ;;  %s219_s4 = sand.u32 1, %s3003_s14  }
  0x54   : > { %s2463_s3 = sshll.u32 %s3043_s24, 4  ;;  %s220_s0 = scalar_lea.vmem [#allocation8], %s219_s4 }
  0x55   : > { %p3319_p12 = por %p149_p8, %p117_p11  ;;  %s225_s5 = scalar_lea.hbm %s3791_s2, %s2463_s3 }
  0x56   : > { %s227_s10 = sshll.u32 %s220_s0, 4  ;;  %p3834_p7 = scmp.lt.s32.totalorder %s3047_s25, 6  ;;  %s228_s10 = int_to_ptr.vmem [resolvable:$true] %s227_s10 }
  0x57   : > { %s3833_s7 = scalar_select %p3319_p12, 1, 0 }
  0x58   : > { %p3330_p5 = pnand %p3834_p7, %p3280_p13  ;;  %s2880_s23 = scalar_lea.vmem %s228_s10, 16 }
  0x59   : > { %p2881_p11 = scmp.ne.s32.totalorder %s228_s10, %s2880_s23  ;;  %s3054_s24 = smov [#allocation8]  }
  0x5a   : > { %p2869_p2 = pneg %p3330_p5  ;;  %s2885_s11 = sshll.u32 %s3054_s24, 4  ;;  %s2886_s11 = int_to_ptr.vmem [resolvable:$false] %s2885_s11 }
  0x5b   : > { %s2887_s3 = scalar_lea.vmem %s2886_s11, 32  ;;  %p2888_p8 = scmp.lt.s32.totalorder %s228_s10, %s2886_s11 }
  0x5c   : > { %p2883_p3 = pnand %p2881_p11, %p2869_p2  ;;  %p2889_p12 = scmp.lt.s32.totalorder %s2887_s3, %s2880_s23 }
  0x5e   : > { %p2884_p6 = pneg %p2883_p3  ;;  %p2890_p1 = por %p2889_p12, %p2888_p8 }
  0x60   : > { %p2891_p10 = pnand %p2890_p1, %p2884_p6 }
  0x62   : > { %2894 = shalt.err (!%p2891_p10)
}
  0x63   : > { %2686 = dma.hbm_to_vmem [thread:$0]  (!%p3330_p5), %s225_s5, 16, %s228_s10, %s3194_s6  }
  0x64   : > { %236 = sbr.rel (%p3208_p4) target bundleno = 708 (0x2c4), region = 32  ;;  %s238_s0 = sand.u32 (!%p3208_p4), 1, %s3023_s19  }
  0x65   : > { %s2465_s18 = sshll.u32 (!%p3208_p4), %s238_s0, 10  ;;  %s239_s4 = scalar_lea.sflag (!%p3208_p4), [#allocation4], %s238_s0 }
  0x66   : > { %s3342_s24 = scalar_lea.vmem (!%p3208_p4), [#allocation3], %s2465_s18 }
  0x69   : > { %2978 = dma.done.wait (%p3260_p9), %s239_s4, 16384  }
  0x6a   : > { %2980 = vsyncadd (%p3260_p9), %s239_s4, 4294950912  ;;  %s247_s11 = sand.u32 1, %s3243_s1   ;;  %s249_s6 = sand.u32 1, %s3011_s16  }
  0x6b   : > { %s2466_s30 = sshll.u32 %s249_s6, 9  ;;  %s248_s9 = scalar_lea.sflag [#allocation7], %s247_s11 }
  0x6c   : > { %s3350_s22 = scalar_lea.vmem [#allocation6], %s2466_s30 }
  0x6d   : > { %2982 = dma.done.wait (%p3269_p0), %s248_s9, 8192  }
  0x6e   : > { %2984 = vsyncadd (%p3269_p0), %s248_s9, 4294959104  ;;  %s3357_s15 = sand.u32 1, %s2999_s13   ;;  %p3836_p4 = scmp.ne.s32.totalorder %s3830_s21, 0 }
  0x6f   : > { %s259_s27 = scalar_lea.vmem [#allocation8], %s3357_s15 }
  0x70   : > { %2986 = dma.done.wait (%p3836_p4), %s248_s9, 16  }
  0x71   : > { %2988 = vsyncadd (%p3836_p4), %s248_s9, 4294967280  ;;  %s2467_s1 = sshll.u32 %s3357_s15, 8  ;;  %s3837_s10 = sld [smem:[#allocation14_spill]] }
  0x72   : > { %s3365_s5 = scalar_lea.vmem [#allocation9], %s2467_s1 }
  0x77   : > { %p2468_p9 = scmp.ne.s32.totalorder %s3837_s10, 0 }
  0x79   : > { %300 = sbr.rel (%p2468_p9) target bundleno = 143 (0x8f), region = 48 }
  0x7e   : > { %v2469_v0 = vld [vmem:[%s259_s27] ss:$0 sm:$0xff] }
  0x7f   : > { %308 = vst [vmem:[#allocation2 + $0xb0] sm:$0xff] %v2469_v0  ;;  %309 = vst [vmem:[#allocation2] sm:$0xff] %v2469_v0 }
  0x80   : > { %310 = vst [vmem:[#allocation2 + $0xd8] sm:$0xff] %v2469_v0  ;;  %311 = vst [vmem:[#allocation2 + $0x18] sm:$0xff] %v2469_v0 }
  0x81   : > { %312 = vst [vmem:[#allocation2 + $0x50] sm:$0xff] %v2469_v0  ;;  %313 = vst [vmem:[#allocation2 + $0x68] sm:$0xff] %v2469_v0 }
  0x82   : > { %314 = vst [vmem:[#allocation2 + $0x30] sm:$0xff] %v2469_v0  ;;  %315 = vst [vmem:[#allocation2 + $0x48] sm:$0xff] %v2469_v0 }
  0x83   : > { %316 = vst [vmem:[#allocation2 + $0x80] sm:$0xff] %v2469_v0  ;;  %317 = vst [vmem:[#allocation2 + $0x88] sm:$0xff] %v2469_v0 }
  0x84   : > { %318 = vst [vmem:[#allocation2 + $0xe8] sm:$0xff] %v2469_v0  ;;  %319 = vst [vmem:[#allocation2 + $0xb8] sm:$0xff] %v2469_v0 }
  0x85   : > { %320 = vst [vmem:[#allocation2 + $0x60] sm:$0xff] %v2469_v0  ;;  %321 = vst [vmem:[#allocation2 + $0xf0] sm:$0xff] %v2469_v0 }
  0x86   : > { %322 = vst [vmem:[#allocation2 + $0x8] sm:$0xff] %v2469_v0  ;;  %323 = vst [vmem:[#allocation2 + $0x78] sm:$0xff] %v2469_v0 }
  0x87   : > { %324 = vst [vmem:[#allocation2 + $0x38] sm:$0xff] %v2469_v0  ;;  %325 = vst [vmem:[#allocation2 + $0x58] sm:$0xff] %v2469_v0 }
  0x88   : > { %326 = vst [vmem:[#allocation2 + $0x40] sm:$0xff] %v2469_v0  ;;  %327 = vst [vmem:[#allocation2 + $0xc8] sm:$0xff] %v2469_v0 }
  0x89   : > { %328 = vst [vmem:[#allocation2 + $0xe0] sm:$0xff] %v2469_v0  ;;  %329 = vst [vmem:[#allocation2 + $0x90] sm:$0xff] %v2469_v0 }
  0x8a   : > { %330 = vst [vmem:[#allocation2 + $0x70] sm:$0xff] %v2469_v0  ;;  %331 = vst [vmem:[#allocation2 + $0xc0] sm:$0xff] %v2469_v0 }
  0x8b   : > { %332 = vst [vmem:[#allocation2 + $0xa8] sm:$0xff] %v2469_v0  ;;  %333 = vst [vmem:[#allocation2 + $0xd0] sm:$0xff] %v2469_v0 }
  0x8c   : > { %334 = vst [vmem:[#allocation2 + $0x10] sm:$0xff] %v2469_v0  ;;  %335 = vst [vmem:[#allocation2 + $0x28] sm:$0xff] %v2469_v0 }
  0x8d   : > { %336 = vst [vmem:[#allocation2 + $0xa0] sm:$0xff] %v2469_v0  ;;  %337 = vst [vmem:[#allocation2 + $0xf8] sm:$0xff] %v2469_v0 }
  0x8e   : > { %338 = vst [vmem:[#allocation2 + $0x20] sm:$0xff] %v2469_v0  ;;  %339 = vst [vmem:[#allocation2 + $0x98] sm:$0xff] %v2469_v0 }
  0x8f PF: > { %v556_v1 = vld [vmem:[%s3350_s22 + $0x1c0] sm:$0xff]  ;;  %v557_v3 = vld [vmem:[%s3350_s22 + $0x1c8] sm:$0xff]  ;;  %s3838_s28 = sld [smem:[#allocation14_spill]] }
  0x90   : > { %v560_v2 = vld [vmem:[%s3350_s22 + $0x1e0] sm:$0xff]  ;;  %v561_v5 = vld [vmem:[%s3350_s22 + $0x1e8] sm:$0xff] }
  0x91   : > { %v2655_v4 = vcombine.high %v556_v1, %v560_v2  ;;  %v2654_v6 = vcombine.low %v556_v1, %v560_v2  ;;  %v548_v7 = vld [vmem:[%s3350_s22 + $0x180] sm:$0xff]  ;;  %v2657_v9 = vcombine.high %v557_v3, %v561_v5  ;;  %v2656_v10 = vcombine.low %v557_v3, %v561_v5  ;;  %v549_v12 = vld [vmem:[%s3350_s22 + $0x188] sm:$0xff]  ;;  %v558_v5 = vld [vmem:[%s3350_s22 + $0x1d0] sm:$0xff] }
  0x92   : > { %v552_v8 = vld [vmem:[%s3350_s22 + $0x1a0] sm:$0xff]  ;;  %v553_v13 = vld [vmem:[%s3350_s22 + $0x1a8] sm:$0xff] }
  0x93   : > { %v2647_v11 = vcombine.high %v548_v7, %v552_v8  ;;  %1524 = vmatprep.subr.bf16.mxu0 %v2655_v4  ;;  %v2649_v14 = vcombine.high %v549_v12, %v553_v13  ;;  %1685 = vmatprep.subr.bf16.mxu1 %v2657_v9  ;;  %v540_v15 = vld [vmem:[%s3350_s22 + $0x140] sm:$0xff]  ;;  %v541_v17 = vld [vmem:[%s3350_s22 + $0x148] sm:$0xff]  ;;  %v2646_v19 = vcombine.low %v548_v7, %v552_v8  ;;  %v559_v7 = vld [vmem:[%s3350_s22 + $0x1d8] sm:$0xff] }
  0x94   : > { %1525 = vmatpush1.bf16.xpose.msra.mxu0 %v2654_v6  ;;  %1686 = vmatpush1.bf16.xpose.msra.mxu1 %v2656_v10  ;;  %v544_v16 = vld [vmem:[%s3350_s22 + $0x160] sm:$0xff]  ;;  %v545_v18 = vld [vmem:[%s3350_s22 + $0x168] sm:$0xff]  ;;  %v2648_v20 = vcombine.low %v549_v12, %v553_v13  ;;  %v562_v6 = vld [vmem:[%s3350_s22 + $0x1f0] sm:$0xff] }
  0x95   : > { %1526 = vmatprep.subr.bf16.mxu0 %v2647_v11  ;;  %1687 = vmatprep.subr.bf16.mxu1 %v2649_v14  ;;  %v2639_v21 = vcombine.high %v540_v15, %v544_v16  ;;  %v2641_v22 = vcombine.high %v541_v17, %v545_v18  ;;  %v3381_v23 = vld [vmem:[%s3342_s24] sm:$0xff]  ;;  %v3387_v25 = vld [vmem:[%s3342_s24 + $0x8] sm:$0xff]  ;;  %v2638_v33 = vcombine.low %v540_v15, %v544_v16  ;;  %v563_v8 = vld [vmem:[%s3350_s22 + $0x1f8] sm:$0xff]  ;;  %p2662_p0 = scmp.ne.s32.totalorder %s3838_s28, 1 }
  0x96   : > { %v3384_v24 = vld [vmem:[%s3342_s24 + $0x20] sm:$0xff]  ;;  %v3390_v26 = vld [vmem:[%s3342_s24 + $0x28] sm:$0xff]  ;;  %v2640_v34 = vcombine.low %v541_v17, %v545_v18  ;;  %v2659_v11 = vcombine.high %v558_v5, %v562_v6  ;;  %v2661_v12 = vcombine.high %v559_v7, %v563_v8  ;;  %v550_v18 = vld [vmem:[%s3350_s22 + $0x190] sm:$0xff] }
  0x97   : > { %v2471_v27 = vcombine.high %v3381_v23, %v3384_v24  ;;  %v2473_v28 = vcombine.high %v3387_v25, %v3390_v26  ;;  %v532_v29 = vld [vmem:[%s3350_s22 + $0x100] sm:$0xff]  ;;  %v533_v31 = vld [vmem:[%s3350_s22 + $0x108] sm:$0xff]  ;;  %v2470_v16 = vcombine.low %v3381_v23, %v3384_v24 }
  0x98   : > { %v536_v30 = vld [vmem:[%s3350_s22 + $0x120] sm:$0xff]  ;;  %v537_v32 = vld [vmem:[%s3350_s22 + $0x128] sm:$0xff] }
  0x99   : > { %1556 = vmatprep.mubr.bf16.mxu0 %v2471_v27  ;;  %1717 = vmatprep.mubr.bf16.mxu1 %v2473_v28  ;;  %v2631_v35 = vcombine.high %v532_v29, %v536_v30  ;;  %v2633_v36 = vcombine.high %v533_v31, %v537_v32  ;;  %v524_v37 = vld [vmem:[%s3350_s22 + $0xc0] sm:$0xff]  ;;  %v525_v39 = vld [vmem:[%s3350_s22 + $0xc8] sm:$0xff]  ;;  %v2630_v41 = vcombine.low %v532_v29, %v536_v30  ;;  %v555_v27 = vld [vmem:[%s3350_s22 + $0x1b8] sm:$0xff] }
  0x9a   : > { %v528_v38 = vld [vmem:[%s3350_s22 + $0xe0] sm:$0xff]  ;;  %v529_v40 = vld [vmem:[%s3350_s22 + $0xe8] sm:$0xff]  ;;  %v2632_v42 = vcombine.low %v533_v31, %v537_v32  ;;  %v2660_v28 = vcombine.low %v559_v7, %v563_v8  ;;  %v531_v7 = vld [vmem:[%s3350_s22 + $0xf8] sm:$0xff] }
  0x9b   : > { %v2623_v43 = vcombine.high %v524_v37, %v528_v38  ;;  %v2625_v44 = vcombine.high %v525_v39, %v529_v40  ;;  %v516_v45 = vld [vmem:[%s3350_s22 + $0x80] sm:$0xff]  ;;  %v517_v47 = vld [vmem:[%s3350_s22 + $0x88] sm:$0xff]  ;;  %v2622_v49 = vcombine.low %v524_v37, %v528_v38  ;;  %v2624_v50 = vcombine.low %v525_v39, %v529_v40  ;;  %v543_v38 = vld [vmem:[%s3350_s22 + $0x158] sm:$0xff] }
  0x9c   : > { %1527 = vmatpush1.bf16.xpose.msra.mxu0 %v2646_v19  ;;  %1688 = vmatpush1.bf16.xpose.msra.mxu1 %v2648_v20  ;;  %v520_v46 = vld [vmem:[%s3350_s22 + $0xa0] sm:$0xff]  ;;  %v521_v48 = vld [vmem:[%s3350_s22 + $0xa8] sm:$0xff]  ;;  %v554_v19 = vld [vmem:[%s3350_s22 + $0x1b0] sm:$0xff]  ;;  %v2472_v20 = vcombine.low %v3387_v25, %v3390_v26 }
  0x9d   : > { %1528 = vmatprep.subr.bf16.mxu0 %v2639_v21  ;;  %1689 = vmatprep.subr.bf16.mxu1 %v2641_v22  ;;  %v2615_v51 = vcombine.high %v516_v45, %v520_v46  ;;  %v2617_v52 = vcombine.high %v517_v47, %v521_v48  ;;  %v508_v53 = vld [vmem:[%s3350_s22 + $0x40] sm:$0xff]  ;;  %v509_v55 = vld [vmem:[%s3350_s22 + $0x48] sm:$0xff]  ;;  %v2614_v57 = vcombine.low %v516_v45, %v520_v46  ;;  %v551_v22 = vld [vmem:[%s3350_s22 + $0x198] sm:$0xff] }
  0x9e   : > { %v512_v54 = vld [vmem:[%s3350_s22 + $0x60] sm:$0xff]  ;;  %v513_v56 = vld [vmem:[%s3350_s22 + $0x68] sm:$0xff]  ;;  %v2616_v58 = vcombine.low %v517_v47, %v521_v48  ;;  %v2658_v21 = vcombine.low %v558_v5, %v562_v6  ;;  %v2651_v31 = vcombine.high %v550_v18, %v554_v19  ;;  %v2653_v23 = vcombine.high %v551_v22, %v555_v27  ;;  %v547_v39 = vld [vmem:[%s3350_s22 + $0x178] sm:$0xff] }
  0x9f   : > { %v2607_v59 = vcombine.high %v508_v53, %v512_v54  ;;  %v2609_v60 = vcombine.high %v509_v55, %v513_v56  ;;  %v500_v61 = vld [vmem:[%s3350_s22] sm:$0xff]  ;;  %v501_v63 = vld [vmem:[%s3350_s22 + $0x8] sm:$0xff]  ;;  %v2606_v1 = vcombine.low %v508_v53, %v512_v54  ;;  %v2608_v2 = vcombine.low %v509_v55, %v513_v56  ;;  %v535_v54 = vld [vmem:[%s3350_s22 + $0x118] sm:$0xff] }
  0xa0   : > { %v504_v62 = vld [vmem:[%s3350_s22 + $0x20] sm:$0xff]  ;;  %v505_v0 = vld [vmem:[%s3350_s22 + $0x28] sm:$0xff]  ;;  %v539_v55 = vld [vmem:[%s3350_s22 + $0x138] sm:$0xff] }
  0xa1   : > { %v2599_v3 = vcombine.high %v500_v61, %v504_v62  ;;  %v2601_v4 = vcombine.high %v501_v63, %v505_v0  ;;  %v2598_v9 = vcombine.low %v500_v61, %v504_v62  ;;  %v2600_v10 = vcombine.low %v501_v63, %v505_v0  ;;  %v380_v13 = vld [vmem:[%s3342_s24 + $0x40] sm:$0xff]  ;;  %v381_v15 = vld [vmem:[%s3342_s24 + $0x48] sm:$0xff]  ;;  %v527_v6 = vld [vmem:[%s3350_s22 + $0xd8] sm:$0xff] }
  0xa2   : > { %v384_v14 = vld [vmem:[%s3342_s24 + $0x60] sm:$0xff]  ;;  %v385_v17 = vld [vmem:[%s3342_s24 + $0x68] sm:$0xff] }
  0xa3   : > { %v2479_v29 = vcombine.high %v380_v13, %v384_v14  ;;  %v2481_v30 = vcombine.high %v381_v15, %v385_v17  ;;  %v388_v24 = vld [vmem:[%s3342_s24 + $0x80] sm:$0xff]  ;;  %v389_v26 = vld [vmem:[%s3342_s24 + $0x88] sm:$0xff] }
  0xa4   : > { %1529 = vmatpush1.bf16.xpose.msra.mxu0 %v2638_v33  ;;  %1690 = vmatpush1.bf16.xpose.msra.mxu1 %v2640_v34  ;;  %v392_v25 = vld [vmem:[%s3342_s24 + $0xa0] sm:$0xff]  ;;  %v393_v32 = vld [vmem:[%s3342_s24 + $0xa8] sm:$0xff]  ;;  %v2478_v33 = vcombine.low %v380_v13, %v384_v14  ;;  %v542_v34 = vld [vmem:[%s3350_s22 + $0x150] sm:$0xff] }
  0xa5   : > { %1530 = vmatprep.subr.bf16.mxu0 %v2631_v35  ;;  %1691 = vmatprep.subr.bf16.mxu1 %v2633_v36  ;;  %v546_v35 = vld [vmem:[%s3350_s22 + $0x170] sm:$0xff]  ;;  %v2480_v36 = vcombine.low %v381_v15, %v385_v17  ;;  %v2487_v37 = vcombine.high %v388_v24, %v392_v25  ;;  %v2489_v40 = vcombine.high %v389_v26, %v393_v32  ;;  %v396_v45 = vld [vmem:[%s3342_s24 + $0xc0] sm:$0xff]  ;;  %v397_v47 = vld [vmem:[%s3342_s24 + $0xc8] sm:$0xff] }
  0xa6   : > { %v400_v46 = vld [vmem:[%s3342_s24 + $0xe0] sm:$0xff]  ;;  %v401_v48 = vld [vmem:[%s3342_s24 + $0xe8] sm:$0xff] }
  0xa7   : > { %v2495_v53 = vcombine.high %v396_v45, %v400_v46  ;;  %v2497_v56 = vcombine.high %v397_v47, %v401_v48  ;;  %v404_v61 = vld [vmem:[%s3342_s24 + $0x100] sm:$0xff]  ;;  %v405_v63 = vld [vmem:[%s3342_s24 + $0x108] sm:$0xff] }
  0xa8   : > { %v408_v62 = vld [vmem:[%s3342_s24 + $0x120] sm:$0xff]  ;;  %v409_v0 = vld [vmem:[%s3342_s24 + $0x128] sm:$0xff] }
  0xa9   : > { %v2503_v5 = vcombine.high %v404_v61, %v408_v62  ;;  %v2505_v8 = vcombine.high %v405_v63, %v409_v0  ;;  %v412_v13 = vld [vmem:[%s3342_s24 + $0x140] sm:$0xff]  ;;  %v413_v15 = vld [vmem:[%s3342_s24 + $0x148] sm:$0xff]  ;;  %v2502_v17 = vcombine.low %v404_v61, %v408_v62 }
  0xaa   : > { %v416_v14 = vld [vmem:[%s3342_s24 + $0x160] sm:$0xff] }
  0xab   : > { %v436_v61 = vld [vmem:[%s3342_s24 + $0x200] sm:$0xff] }
  0xac   : > { %1531 = vmatpush1.bf16.xpose.msra.mxu0 %v2630_v41  ;;  %1692 = vmatpush1.bf16.xpose.msra.mxu1 %v2632_v42  ;;  %v2650_v41 = vcombine.low %v550_v18, %v554_v19  ;;  %v2652_v42 = vcombine.low %v551_v22, %v555_v27  ;;  %v518_v18 = vld [vmem:[%s3350_s22 + $0x90] sm:$0xff]  ;;  %v519_v22 = vld [vmem:[%s3350_s22 + $0x98] sm:$0xff]  ;;  %v440_v62 = vld [vmem:[%s3342_s24 + $0x220] sm:$0xff] }
  0xad   : > { %1532 = vmatprep.subr.bf16.mxu0 %v2623_v43  ;;  %1693 = vmatprep.subr.bf16.mxu1 %v2625_v44  ;;  %v2643_v43 = vcombine.high %v542_v34, %v546_v35  ;;  %v2645_v44 = vcombine.high %v543_v38, %v547_v39  ;;  %v522_v19 = vld [vmem:[%s3350_s22 + $0xb0] sm:$0xff]  ;;  %v523_v27 = vld [vmem:[%s3350_s22 + $0xb8] sm:$0xff] }
  0xb4   : > { %1533 = vmatpush1.bf16.xpose.msra.mxu0 %v2622_v49  ;;  %1694 = vmatpush1.bf16.xpose.msra.mxu1 %v2624_v50  ;;  %v2486_v49 = vcombine.low %v388_v24, %v392_v25  ;;  %v534_v50 = vld [vmem:[%s3350_s22 + $0x110] sm:$0xff]  ;;  %v420_v24 = vld [vmem:[%s3342_s24 + $0x180] sm:$0xff] }
  0xb5   : > { %1534 = vmatprep.subr.bf16.mxu0 %v2615_v51  ;;  %1695 = vmatprep.subr.bf16.mxu1 %v2617_v52  ;;  %v538_v51 = vld [vmem:[%s3350_s22 + $0x130] sm:$0xff]  ;;  %v2488_v52 = vcombine.low %v389_v26, %v393_v32  ;;  %v424_v25 = vld [vmem:[%s3342_s24 + $0x1a0] sm:$0xff]  ;;  %v421_v26 = vld [vmem:[%s3342_s24 + $0x188] sm:$0xff] }
  0xb6   : > { %v425_v32 = vld [vmem:[%s3342_s24 + $0x1a8] sm:$0xff] }
  0xbc   : > { %1535 = vmatpush1.bf16.xpose.msra.mxu0 %v2614_v57  ;;  %1696 = vmatpush1.bf16.xpose.msra.mxu1 %v2616_v58  ;;  %v2642_v57 = vcombine.low %v542_v34, %v546_v35  ;;  %v2644_v58 = vcombine.low %v543_v38, %v547_v39  ;;  %v510_v34 = vld [vmem:[%s3350_s22 + $0x50] sm:$0xff]  ;;  %v511_v38 = vld [vmem:[%s3350_s22 + $0x58] sm:$0xff] }
  0xbd   : > { %1536 = vmatprep.subr.bf16.mxu0 %v2607_v59  ;;  %1697 = vmatprep.subr.bf16.mxu1 %v2609_v60  ;;  %v2635_v59 = vcombine.high %v534_v50, %v538_v51  ;;  %v2637_v60 = vcombine.high %v535_v54, %v539_v55  ;;  %v514_v35 = vld [vmem:[%s3350_s22 + $0x70] sm:$0xff]  ;;  %v515_v39 = vld [vmem:[%s3350_s22 + $0x78] sm:$0xff] }
  0xc4   : > { %1537 = vmatpush1.bf16.xpose.msra.mxu0 %v2606_v1  ;;  %1698 = vmatpush1.bf16.xpose.msra.mxu1 %v2608_v2  ;;  %v2494_v1 = vcombine.low %v396_v45, %v400_v46  ;;  %v526_v2 = vld [vmem:[%s3350_s22 + $0xd0] sm:$0xff]  ;;  %v428_v45 = vld [vmem:[%s3342_s24 + $0x1c0] sm:$0xff] }
  0xc5   : > { %1538 = vmatprep.subr.bf16.mxu0 %v2599_v3  ;;  %1699 = vmatprep.subr.bf16.mxu1 %v2601_v4  ;;  %v530_v3 = vld [vmem:[%s3350_s22 + $0xf0] sm:$0xff]  ;;  %v2496_v4 = vcombine.low %v397_v47, %v401_v48  ;;  %v432_v46 = vld [vmem:[%s3342_s24 + $0x1e0] sm:$0xff]  ;;  %v429_v47 = vld [vmem:[%s3342_s24 + $0x1c8] sm:$0xff] }
  0xc6   : > { %v433_v48 = vld [vmem:[%s3342_s24 + $0x1e8] sm:$0xff] }
  0xcc   : > { %1539 = vmatpush1.bf16.xpose.msra.mxu0 %v2598_v9  ;;  %1700 = vmatpush1.bf16.xpose.msra.mxu1 %v2600_v10  ;;  %v2634_v9 = vcombine.low %v534_v50, %v538_v51  ;;  %v2636_v10 = vcombine.low %v535_v54, %v539_v55  ;;  %v502_v50 = vld [vmem:[%s3350_s22 + $0x10] sm:$0xff]  ;;  %v503_v54 = vld [vmem:[%s3350_s22 + $0x18] sm:$0xff] }
  0xcd   : > { %1846 = vmatprep.subr.bf16.mxu0 %v2659_v11  ;;  %2007 = vmatprep.subr.bf16.mxu1 %v2661_v12  ;;  %v2627_v11 = vcombine.high %v526_v2, %v530_v3  ;;  %v2629_v12 = vcombine.high %v527_v6, %v531_v7  ;;  %v506_v51 = vld [vmem:[%s3350_s22 + $0x30] sm:$0xff]  ;;  %v507_v55 = vld [vmem:[%s3350_s22 + $0x38] sm:$0xff] }
  0xd3   : > { %1557 = vmatmul.mubr.bf16.vlgmr.msra.gmra.mxu0 %v2470_v16  ;;  %1718 = vmatmul.mubr.bf16.vlgmr.msra.gmra.mxu1 %v2472_v20  ;;  %v417_v16 = vld [vmem:[%s3342_s24 + $0x168] sm:$0xff]  ;;  %v2504_v20 = vcombine.low %v405_v63, %v409_v0 }
  0xd4   : > { %1847 = vmatpush1.bf16.xpose.msra.mxu0 %v2658_v21  ;;  %2008 = vmatpush1.bf16.xpose.msra.mxu1 %v2660_v28  ;;  %v2511_v21 = vcombine.high %v412_v13, %v416_v14  ;;  %v2513_v28 = vcombine.high %v413_v15, %v417_v16  ;;  %v437_v63 = vld [vmem:[%s3342_s24 + $0x208] sm:$0xff] }
  0xd5   : > { %1564 = vmatprep.mubr.bf16.mxu0 %v2479_v29  ;;  %1725 = vmatprep.mubr.bf16.mxu1 %v2481_v30  ;;  %v2626_v29 = vcombine.low %v526_v2, %v530_v3  ;;  %v2628_v30 = vcombine.low %v527_v6, %v531_v7  ;;  %v441_v0 = vld [vmem:[%s3342_s24 + $0x228] sm:$0xff]  ;;  %v2528_v2 = vcombine.low %v429_v47, %v433_v48  ;;  %v444_v7 = vld [vmem:[%s3342_s24 + $0x240] sm:$0xff] }
  0xd6   : > { %1848 = vmatprep.subr.bf16.mxu0 %v2651_v31  ;;  %2009 = vmatprep.subr.bf16.mxu1 %v2653_v23  ;;  %v2619_v31 = vcombine.high %v518_v18, %v522_v19  ;;  %v2621_v23 = vcombine.high %v519_v22, %v523_v27  ;;  %v2535_v3 = vcombine.high %v436_v61, %v440_v62 }
  0xd7   : > { %v2604_v6 = vcombine.low %v503_v54, %v507_v55 }
  0xdb   : > { %1565 = vmatmul.mubr.bf16.gmra.mxu0 %v2478_v33  ;;  %1726 = vmatmul.mubr.bf16.gmra.mxu1 %v2480_v36  ;;  %v2510_v33 = vcombine.low %v412_v13, %v416_v14  ;;  %v2512_v36 = vcombine.low %v413_v15, %v417_v16  ;;  %v452_v15 = vld [vmem:[%s3342_s24 + $0x280] sm:$0xff] }
  0xdc   : > { %1572 = vmatprep.mubr.bf16.mxu0 %v2487_v37  ;;  %1733 = vmatprep.mubr.bf16.mxu1 %v2489_v40  ;;  %v2519_v37 = vcombine.high %v420_v24, %v424_v25  ;;  %v2521_v40 = vcombine.high %v421_v26, %v425_v32  ;;  %v456_v16 = vld [vmem:[%s3342_s24 + $0x2a0] sm:$0xff] }
  0xdd   : > { %1849 = vmatpush1.bf16.xpose.msra.mxu0 %v2650_v41  ;;  %2010 = vmatpush1.bf16.xpose.msra.mxu1 %v2652_v42  ;;  %v2618_v41 = vcombine.low %v518_v18, %v522_v19  ;;  %v2620_v42 = vcombine.low %v519_v22, %v523_v27  ;;  %v457_v18 = vld [vmem:[%s3342_s24 + $0x2a8] sm:$0xff]  ;;  %v460_v27 = vld [vmem:[%s3342_s24 + $0x2c0] sm:$0xff] }
  0xde   : > { %1850 = vmatprep.subr.bf16.mxu0 %v2643_v43  ;;  %2011 = vmatprep.subr.bf16.mxu1 %v2645_v44  ;;  %v2611_v43 = vcombine.high %v510_v34, %v514_v35  ;;  %v2613_v44 = vcombine.high %v511_v38, %v515_v39 }
  0xe3   : > { %1573 = vmatmul.mubr.bf16.gmra.mxu0 %v2486_v49  ;;  %1734 = vmatmul.mubr.bf16.gmra.mxu1 %v2488_v52  ;;  %v2518_v49 = vcombine.low %v420_v24, %v424_v25  ;;  %v2520_v52 = vcombine.low %v421_v26, %v425_v32  ;;  %v468_v26 = vld [vmem:[%s3342_s24 + $0x300] sm:$0xff] }
  0xe4   : > { %1580 = vmatprep.mubr.bf16.mxu0 %v2495_v53  ;;  %1741 = vmatprep.mubr.bf16.mxu1 %v2497_v56  ;;  %v2527_v53 = vcombine.high %v428_v45, %v432_v46  ;;  %v2529_v56 = vcombine.high %v429_v47, %v433_v48  ;;  %v472_v32 = vld [vmem:[%s3342_s24 + $0x320] sm:$0xff] }
  0xe5   : > { %1851 = vmatpush1.bf16.xpose.msra.mxu0 %v2642_v57  ;;  %2012 = vmatpush1.bf16.xpose.msra.mxu1 %v2644_v58  ;;  %v2610_v57 = vcombine.low %v510_v34, %v514_v35  ;;  %v2612_v58 = vcombine.low %v511_v38, %v515_v39  ;;  %v473_v34 = vld [vmem:[%s3342_s24 + $0x328] sm:$0xff]  ;;  %v476_v39 = vld [vmem:[%s3342_s24 + $0x340] sm:$0xff] }
  0xe6   : > { %1852 = vmatprep.subr.bf16.mxu0 %v2635_v59  ;;  %2013 = vmatprep.subr.bf16.mxu1 %v2637_v60  ;;  %v2603_v59 = vcombine.high %v502_v50, %v506_v51  ;;  %v2605_v60 = vcombine.high %v503_v54, %v507_v55  ;;  %v484_v47 = vld [vmem:[%s3342_s24 + $0x380] sm:$0xff] }
  0xe7   : > { %v488_v48 = vld [vmem:[%s3342_s24 + $0x3a0] sm:$0xff] }
  0xe8   : > { %v492_v55 = vld [vmem:[%s3342_s24 + $0x3c0] sm:$0xff] }
  0xeb   : > { %1581 = vmatmul.mubr.bf16.gmra.mxu0 %v2494_v1  ;;  %1742 = vmatmul.mubr.bf16.gmra.mxu1 %v2496_v4  ;;  %v2526_v1 = vcombine.low %v428_v45, %v432_v46  ;;  %v2537_v4 = vcombine.high %v437_v63, %v441_v0 }
  0xec   : > { %1588 = vmatprep.mubr.bf16.mxu0 %v2503_v5  ;;  %1749 = vmatprep.mubr.bf16.mxu1 %v2505_v8  ;;  %v2602_v5 = vcombine.low %v502_v50, %v506_v51  ;;  %v448_v8 = vld [vmem:[%s3342_s24 + $0x260] sm:$0xff]  ;;  %v489_v50 = vld [vmem:[%s3342_s24 + $0x3a8] sm:$0xff] }
  0xed   : > { %1853 = vmatpush1.bf16.xpose.msra.mxu0 %v2634_v9  ;;  %2014 = vmatpush1.bf16.xpose.msra.mxu1 %v2636_v10  ;;  %v445_v9 = vld [vmem:[%s3342_s24 + $0x248] sm:$0xff]  ;;  %v2543_v13 = vcombine.high %v444_v7, %v448_v8  ;;  %v2542_v19 = vcombine.low %v444_v7, %v448_v8  ;;  %v382_v7 = vld [vmem:[%s3342_s24 + $0x50] sm:$0xff] }
  0xee   : > { %1854 = vmatprep.subr.bf16.mxu0 %v2627_v11  ;;  %2015 = vmatprep.subr.bf16.mxu1 %v2629_v12  ;;  %v449_v10 = vld [vmem:[%s3342_s24 + $0x268] sm:$0xff]  ;;  %v2534_v11 = vcombine.low %v436_v61, %v440_v62  ;;  %v2536_v12 = vcombine.low %v437_v63, %v441_v0  ;;  %v374_v63 = vld [vmem:[%s3342_s24 + $0x10] sm:$0xff] }
  0xef   : > { %v2545_v14 = vcombine.high %v445_v9, %v449_v10  ;;  %v378_v0 = vld [vmem:[%s3342_s24 + $0x30] sm:$0xff] }
  0xf0   : > { %v386_v8 = vld [vmem:[%s3342_s24 + $0x70] sm:$0xff] }
  0xf3   : > { %1589 = vmatmul.mubr.bf16.gmra.mxu0 %v2502_v17  ;;  %1750 = vmatmul.mubr.bf16.gmra.mxu1 %v2504_v20  ;;  %v453_v17 = vld [vmem:[%s3342_s24 + $0x288] sm:$0xff]  ;;  %v2544_v20 = vcombine.low %v445_v9, %v449_v10  ;;  %v383_v9 = vld [vmem:[%s3342_s24 + $0x58] sm:$0xff] }
  0xf4   : > { %1596 = vmatprep.mubr.bf16.mxu0 %v2511_v21  ;;  %1757 = vmatprep.mubr.bf16.mxu1 %v2513_v28  ;;  %v2551_v21 = vcombine.high %v452_v15, %v456_v16  ;;  %v2553_v22 = vcombine.high %v453_v17, %v457_v18  ;;  %v464_v28 = vld [vmem:[%s3342_s24 + $0x2e0] sm:$0xff]  ;;  %v387_v10 = vld [vmem:[%s3342_s24 + $0x78] sm:$0xff] }
  0xf5   : > { %1855 = vmatpush1.bf16.xpose.msra.mxu0 %v2626_v29  ;;  %2016 = vmatpush1.bf16.xpose.msra.mxu1 %v2628_v30  ;;  %v461_v29 = vld [vmem:[%s3342_s24 + $0x2c8] sm:$0xff]  ;;  %v2559_v24 = vcombine.high %v460_v27, %v464_v28  ;;  %v2558_v35 = vcombine.low %v460_v27, %v464_v28  ;;  %v398_v27 = vld [vmem:[%s3342_s24 + $0xd0] sm:$0xff] }
  0xf6   : > { %1856 = vmatprep.subr.bf16.mxu0 %v2619_v31  ;;  %2017 = vmatprep.subr.bf16.mxu1 %v2621_v23  ;;  %v465_v30 = vld [vmem:[%s3342_s24 + $0x2e8] sm:$0xff]  ;;  %v2550_v31 = vcombine.low %v452_v15, %v456_v16  ;;  %v2552_v23 = vcombine.low %v453_v17, %v457_v18  ;;  %v390_v15 = vld [vmem:[%s3342_s24 + $0x90] sm:$0xff]  ;;  %v391_v17 = vld [vmem:[%s3342_s24 + $0x98] sm:$0xff] }
  0xf7   : > { %v2561_v25 = vcombine.high %v461_v29, %v465_v30  ;;  %v394_v16 = vld [vmem:[%s3342_s24 + $0xb0] sm:$0xff]  ;;  %v395_v18 = vld [vmem:[%s3342_s24 + $0xb8] sm:$0xff] }
  0xf8   : > { %v402_v28 = vld [vmem:[%s3342_s24 + $0xf0] sm:$0xff] }
  0xfb   : > { %1597 = vmatmul.mubr.bf16.gmra.mxu0 %v2510_v33  ;;  %1758 = vmatmul.mubr.bf16.gmra.mxu1 %v2512_v36  ;;  %v469_v33 = vld [vmem:[%s3342_s24 + $0x308] sm:$0xff]  ;;  %v2560_v36 = vcombine.low %v461_v29, %v465_v30  ;;  %v399_v29 = vld [vmem:[%s3342_s24 + $0xd8] sm:$0xff] }
  0xfc   : > { %1604 = vmatprep.mubr.bf16.mxu0 %v2519_v37  ;;  %1765 = vmatprep.mubr.bf16.mxu1 %v2521_v40  ;;  %v2567_v37 = vcombine.high %v468_v26, %v472_v32  ;;  %v2569_v38 = vcombine.high %v469_v33, %v473_v34  ;;  %v480_v40 = vld [vmem:[%s3342_s24 + $0x360] sm:$0xff]  ;;  %v403_v30 = vld [vmem:[%s3342_s24 + $0xf8] sm:$0xff] }
  0xfd   : > { %1857 = vmatpush1.bf16.xpose.msra.mxu0 %v2618_v41  ;;  %2018 = vmatpush1.bf16.xpose.msra.mxu1 %v2620_v42  ;;  %v477_v41 = vld [vmem:[%s3342_s24 + $0x348] sm:$0xff]  ;;  %v2575_v45 = vcombine.high %v476_v39, %v480_v40  ;;  %v2574_v51 = vcombine.low %v476_v39, %v480_v40  ;;  %v414_v39 = vld [vmem:[%s3342_s24 + $0x150] sm:$0xff] }
  0xfe   : > { %1858 = vmatprep.subr.bf16.mxu0 %v2611_v43  ;;  %2019 = vmatprep.subr.bf16.mxu1 %v2613_v44  ;;  %v481_v42 = vld [vmem:[%s3342_s24 + $0x368] sm:$0xff]  ;;  %v2566_v43 = vcombine.low %v468_v26, %v472_v32  ;;  %v2568_v44 = vcombine.low %v469_v33, %v473_v34  ;;  %v406_v26 = vld [vmem:[%s3342_s24 + $0x110] sm:$0xff]  ;;  %v407_v33 = vld [vmem:[%s3342_s24 + $0x118] sm:$0xff] }
  0xff   : > { %v2577_v46 = vcombine.high %v477_v41, %v481_v42  ;;  %v410_v32 = vld [vmem:[%s3342_s24 + $0x130] sm:$0xff]  ;;  %v411_v34 = vld [vmem:[%s3342_s24 + $0x138] sm:$0xff] }
 0x100   : > { %v418_v40 = vld [vmem:[%s3342_s24 + $0x170] sm:$0xff] }
 0x103   : > { %1605 = vmatmul.mubr.bf16.gmra.mxu0 %v2518_v49  ;;  %1766 = vmatmul.mubr.bf16.gmra.mxu1 %v2520_v52  ;;  %v485_v49 = vld [vmem:[%s3342_s24 + $0x388] sm:$0xff]  ;;  %v2576_v52 = vcombine.low %v477_v41, %v481_v42  ;;  %v415_v41 = vld [vmem:[%s3342_s24 + $0x158] sm:$0xff] }
 0x104   : > { %1612 = vmatprep.mubr.bf16.mxu0 %v2527_v53  ;;  %1773 = vmatprep.mubr.bf16.mxu1 %v2529_v56  ;;  %v2583_v53 = vcombine.high %v484_v47, %v488_v48  ;;  %v2585_v54 = vcombine.high %v485_v49, %v489_v50  ;;  %v496_v56 = vld [vmem:[%s3342_s24 + $0x3e0] sm:$0xff]  ;;  %v419_v42 = vld [vmem:[%s3342_s24 + $0x178] sm:$0xff] }
 0x105   : > { %1859 = vmatpush1.bf16.xpose.msra.mxu0 %v2610_v57  ;;  %2020 = vmatpush1.bf16.xpose.msra.mxu1 %v2612_v58  ;;  %v493_v57 = vld [vmem:[%s3342_s24 + $0x3c8] sm:$0xff]  ;;  %v2591_v61 = vcombine.high %v492_v55, %v496_v56 }
 0x106   : > { %1860 = vmatprep.subr.bf16.mxu0 %v2603_v59  ;;  %2021 = vmatprep.subr.bf16.mxu1 %v2605_v60  ;;  %v497_v58 = vld [vmem:[%s3342_s24 + $0x3e8] sm:$0xff]  ;;  %v2582_v59 = vcombine.low %v484_v47, %v488_v48  ;;  %v2584_v60 = vcombine.low %v485_v49, %v489_v50  ;;  %v422_v47 = vld [vmem:[%s3342_s24 + $0x190] sm:$0xff]  ;;  %v423_v49 = vld [vmem:[%s3342_s24 + $0x198] sm:$0xff] }
 0x107   : > { %v2593_v62 = vcombine.high %v493_v57, %v497_v58  ;;  %v426_v48 = vld [vmem:[%s3342_s24 + $0x1b0] sm:$0xff]  ;;  %v427_v50 = vld [vmem:[%s3342_s24 + $0x1b8] sm:$0xff] }
 0x10b   : > { %1613 = vmatmul.mubr.bf16.gmra.mxu0 %v2526_v1  ;;  %1774 = vmatmul.mubr.bf16.gmra.mxu1 %v2528_v2  ;;  %v375_v1 = vld [vmem:[%s3342_s24 + $0x18] sm:$0xff] }
 0x10c   : > { %1620 = vmatprep.mubr.bf16.mxu0 %v2535_v3  ;;  %1781 = vmatprep.mubr.bf16.mxu1 %v2537_v4  ;;  %v379_v2 = vld [vmem:[%s3342_s24 + $0x38] sm:$0xff]  ;;  %v2590_v3 = vcombine.low %v492_v55, %v496_v56  ;;  %v2592_v4 = vcombine.low %v493_v57, %v497_v58  ;;  %v430_v55 = vld [vmem:[%s3342_s24 + $0x1d0] sm:$0xff] }
 0x10d   : > { %1861 = vmatpush1.bf16.xpose.msra.mxu0 %v2602_v5  ;;  %2022 = vmatpush1.bf16.xpose.msra.mxu1 %v2604_v6  ;;  %v2475_v5 = vcombine.high %v374_v63, %v378_v0  ;;  %v2477_v6 = vcombine.high %v375_v1, %v379_v2  ;;  %v434_v56 = vld [vmem:[%s3342_s24 + $0x1f0] sm:$0xff]  ;;  %v431_v57 = vld [vmem:[%s3342_s24 + $0x1d8] sm:$0xff] }
 0x10e   : > { %v435_v58 = vld [vmem:[%s3342_s24 + $0x1f8] sm:$0xff] }
 0x113   : > { %1621 = vmatmul.mubr.bf16.gmra.mxu0 %v2534_v11  ;;  %1782 = vmatmul.mubr.bf16.gmra.mxu1 %v2536_v12  ;;  %v2474_v11 = vcombine.low %v374_v63, %v378_v0  ;;  %v2476_v12 = vcombine.low %v375_v1, %v379_v2  ;;  %v438_v63 = vld [vmem:[%s3342_s24 + $0x210] sm:$0xff]  ;;  %v439_v1 = vld [vmem:[%s3342_s24 + $0x218] sm:$0xff] }
 0x114   : > { %1628 = vmatprep.mubr.bf16.mxu0 %v2543_v13  ;;  %1789 = vmatprep.mubr.bf16.mxu1 %v2545_v14  ;;  %v2483_v13 = vcombine.high %v382_v7, %v386_v8  ;;  %v2485_v14 = vcombine.high %v383_v9, %v387_v10  ;;  %v442_v0 = vld [vmem:[%s3342_s24 + $0x230] sm:$0xff]  ;;  %v443_v2 = vld [vmem:[%s3342_s24 + $0x238] sm:$0xff] }
 0x11b   : > { %1629 = vmatmul.mubr.bf16.gmra.mxu0 %v2542_v19  ;;  %1790 = vmatmul.mubr.bf16.gmra.mxu1 %v2544_v20  ;;  %v2482_v19 = vcombine.low %v382_v7, %v386_v8  ;;  %v2484_v20 = vcombine.low %v383_v9, %v387_v10  ;;  %v446_v7 = vld [vmem:[%s3342_s24 + $0x250] sm:$0xff]  ;;  %v447_v9 = vld [vmem:[%s3342_s24 + $0x258] sm:$0xff] }
 0x11c   : > { %1636 = vmatprep.mubr.bf16.mxu0 %v2551_v21  ;;  %1797 = vmatprep.mubr.bf16.mxu1 %v2553_v22  ;;  %v2491_v21 = vcombine.high %v390_v15, %v394_v16  ;;  %v2493_v22 = vcombine.high %v391_v17, %v395_v18  ;;  %v450_v8 = vld [vmem:[%s3342_s24 + $0x270] sm:$0xff]  ;;  %v451_v10 = vld [vmem:[%s3342_s24 + $0x278] sm:$0xff] }
 0x123   : > { %1637 = vmatmul.mubr.bf16.gmra.mxu0 %v2550_v31  ;;  %1798 = vmatmul.mubr.bf16.gmra.mxu1 %v2552_v23  ;;  %v2490_v31 = vcombine.low %v390_v15, %v394_v16  ;;  %v2492_v23 = vcombine.low %v391_v17, %v395_v18 }
 0x124   : > { %1644 = vmatprep.mubr.bf16.mxu0 %v2559_v24  ;;  %1805 = vmatprep.mubr.bf16.mxu1 %v2561_v25  ;;  %v2499_v24 = vcombine.high %v398_v27, %v402_v28  ;;  %v2501_v25 = vcombine.high %v399_v29, %v403_v30 }
 0x12b   : > { %1645 = vmatmul.mubr.bf16.gmra.mxu0 %v2558_v35  ;;  %1806 = vmatmul.mubr.bf16.gmra.mxu1 %v2560_v36  ;;  %v2498_v35 = vcombine.low %v398_v27, %v402_v28  ;;  %v2500_v36 = vcombine.low %v399_v29, %v403_v30  ;;  %v459_v27 = vld [vmem:[%s3342_s24 + $0x2b8] sm:$0xff]  ;;  %v2546_v29 = vcombine.low %v446_v7, %v450_v8 }
 0x12c   : > { %1652 = vmatprep.mubr.bf16.mxu0 %v2567_v37  ;;  %1813 = vmatprep.mubr.bf16.mxu1 %v2569_v38  ;;  %v2507_v37 = vcombine.high %v406_v26, %v410_v32  ;;  %v2509_v38 = vcombine.high %v407_v33, %v411_v34 }
 0x133   : > { %1653 = vmatmul.mubr.bf16.gmra.mxu0 %v2566_v43  ;;  %1814 = vmatmul.mubr.bf16.gmra.mxu1 %v2568_v44  ;;  %v2506_v43 = vcombine.low %v406_v26, %v410_v32  ;;  %v2508_v44 = vcombine.low %v407_v33, %v411_v34 }
 0x134   : > { %1660 = vmatprep.mubr.bf16.mxu0 %v2575_v45  ;;  %1821 = vmatprep.mubr.bf16.mxu1 %v2577_v46  ;;  %v2515_v45 = vcombine.high %v414_v39, %v418_v40  ;;  %v2517_v46 = vcombine.high %v415_v41, %v419_v42 }
 0x13b   : > { %1661 = vmatmul.mubr.bf16.gmra.mxu0 %v2574_v51  ;;  %1822 = vmatmul.mubr.bf16.gmra.mxu1 %v2576_v52  ;;  %v2514_v51 = vcombine.low %v414_v39, %v418_v40  ;;  %v2516_v52 = vcombine.low %v415_v41, %v419_v42  ;;  %v463_v40 = vld [vmem:[%s3342_s24 + $0x2d8] sm:$0xff] }
 0x13c   : > { %1668 = vmatprep.mubr.bf16.mxu0 %v2583_v53  ;;  %1829 = vmatprep.mubr.bf16.mxu1 %v2585_v54  ;;  %v2523_v53 = vcombine.high %v422_v47, %v426_v48  ;;  %v2525_v54 = vcombine.high %v423_v49, %v427_v50  ;;  %v467_v41 = vld [vmem:[%s3342_s24 + $0x2f8] sm:$0xff] }
 0x143   : > { %1669 = vmatmul.mubr.bf16.gmra.mxu0 %v2582_v59  ;;  %1830 = vmatmul.mubr.bf16.gmra.mxu1 %v2584_v60  ;;  %v2522_v59 = vcombine.low %v422_v47, %v426_v48  ;;  %v2524_v60 = vcombine.low %v423_v49, %v427_v50  ;;  %v2565_v49 = vcombine.high %v463_v40, %v467_v41 }
 0x144   : > { %1676 = vmatprep.mubr.bf16.mxu0 %v2591_v61  ;;  %1837 = vmatprep.mubr.bf16.mxu1 %v2593_v62  ;;  %v2531_v61 = vcombine.high %v430_v55, %v434_v56  ;;  %v2533_v62 = vcombine.high %v431_v57, %v435_v58 }
 0x14b   : > { %1677 = vmatmul.mubr.bf16.gmra.mxu0 %v2590_v3  ;;  %1838 = vmatmul.mubr.bf16.gmra.mxu1 %v2592_v4  ;;  %v2530_v3 = vcombine.low %v430_v55, %v434_v56  ;;  %v2532_v4 = vcombine.low %v431_v57, %v435_v58  ;;  %v470_v55 = vld [vmem:[%s3342_s24 + $0x310] sm:$0xff]  ;;  %v471_v58 = vld [vmem:[%s3342_s24 + $0x318] sm:$0xff] }
 0x14c   : > { %1878 = vmatprep.mubr.bf16.mxu0 %v2475_v5  ;;  %2039 = vmatprep.mubr.bf16.mxu1 %v2477_v6  ;;  %v2539_v5 = vcombine.high %v438_v63, %v442_v0  ;;  %v2541_v6 = vcombine.high %v439_v1, %v443_v2  ;;  %v474_v56 = vld [vmem:[%s3342_s24 + $0x330] sm:$0xff] }
 0x153   : > { %1879 = vmatmul.mubr.bf16.vlgmr.msra.gmra.mxu0 %v2474_v11  ;;  %2040 = vmatmul.mubr.bf16.vlgmr.msra.gmra.mxu1 %v2476_v12  ;;  %v2538_v11 = vcombine.low %v438_v63, %v442_v0  ;;  %v2540_v12 = vcombine.low %v439_v1, %v443_v2  ;;  %v2564_v63 = vcombine.low %v463_v40, %v467_v41 }
 0x154   : > { %1886 = vmatprep.mubr.bf16.mxu0 %v2483_v13  ;;  %2047 = vmatprep.mubr.bf16.mxu1 %v2485_v14  ;;  %v2547_v13 = vcombine.high %v446_v7, %v450_v8  ;;  %v2549_v14 = vcombine.high %v447_v9, %v451_v10  ;;  %v2571_v0 = vcombine.high %v470_v55, %v474_v56 }
 0x15b   : > { %1887 = vmatmul.mubr.bf16.gmra.mxu0 %v2482_v19  ;;  %2048 = vmatmul.mubr.bf16.gmra.mxu1 %v2484_v20  ;;  %v454_v19 = vld [vmem:[%s3342_s24 + $0x290] sm:$0xff] }
 0x15c   : > { %1894 = vmatprep.mubr.bf16.mxu0 %v2491_v21  ;;  %2055 = vmatprep.mubr.bf16.mxu1 %v2493_v22  ;;  %v458_v20 = vld [vmem:[%s3342_s24 + $0x2b0] sm:$0xff]  ;;  %v455_v22 = vld [vmem:[%s3342_s24 + $0x298] sm:$0xff] }
 0x15d   : > { %v2557_v26 = vcombine.high %v455_v22, %v459_v27 }
 0x163   : > { %1895 = vmatmul.mubr.bf16.gmra.mxu0 %v2490_v31  ;;  %2056 = vmatmul.mubr.bf16.gmra.mxu1 %v2492_v23  ;;  %v2548_v31 = vcombine.low %v447_v9, %v451_v10  ;;  %v2555_v23 = vcombine.high %v454_v19, %v458_v20  ;;  %v478_v9 = vld [vmem:[%s3342_s24 + $0x350] sm:$0xff] }
 0x164   : > { %1902 = vmatprep.mubr.bf16.mxu0 %v2499_v24  ;;  %2063 = vmatprep.mubr.bf16.mxu1 %v2501_v25  ;;  %v482_v10 = vld [vmem:[%s3342_s24 + $0x370] sm:$0xff] }
 0x16b   : > { %1903 = vmatmul.mubr.bf16.gmra.mxu0 %v2498_v35  ;;  %2064 = vmatmul.mubr.bf16.gmra.mxu1 %v2500_v36 }
 0x16c   : > { %1910 = vmatprep.mubr.bf16.mxu0 %v2507_v37  ;;  %2071 = vmatprep.mubr.bf16.mxu1 %v2509_v38  ;;  %v462_v37 = vld [vmem:[%s3342_s24 + $0x2d0] sm:$0xff] }
 0x16d   : > { %v466_v38 = vld [vmem:[%s3342_s24 + $0x2f0] sm:$0xff] }
 0x173   : > { %1911 = vmatmul.mubr.bf16.gmra.mxu0 %v2506_v43  ;;  %2072 = vmatmul.mubr.bf16.gmra.mxu1 %v2508_v44  ;;  %v2554_v43 = vcombine.low %v454_v19, %v458_v20  ;;  %v2579_v19 = vcombine.high %v478_v9, %v482_v10 }
 0x174   : > { %1918 = vmatprep.mubr.bf16.mxu0 %v2515_v45  ;;  %2079 = vmatprep.mubr.bf16.mxu1 %v2517_v46  ;;  %v2556_v45 = vcombine.low %v455_v22, %v459_v27  ;;  %v2563_v46 = vcombine.high %v462_v37, %v466_v38 }
 0x17b   : > { %1919 = vmatmul.mubr.bf16.gmra.mxu0 %v2514_v51  ;;  %2080 = vmatmul.mubr.bf16.gmra.mxu1 %v2516_v52 }
 0x17c   : > { %1926 = vmatprep.mubr.bf16.mxu0 %v2523_v53  ;;  %2087 = vmatprep.mubr.bf16.mxu1 %v2525_v54 }
 0x183   : > { %1927 = vmatmul.mubr.bf16.gmra.mxu0 %v2522_v59  ;;  %2088 = vmatmul.mubr.bf16.gmra.mxu1 %v2524_v60  ;;  %v475_v59 = vld [vmem:[%s3342_s24 + $0x338] sm:$0xff] }
 0x184   : > { %1934 = vmatprep.mubr.bf16.mxu0 %v2531_v61  ;;  %2095 = vmatprep.mubr.bf16.mxu1 %v2533_v62  ;;  %v2562_v61 = vcombine.low %v462_v37, %v466_v38 }
 0x18b   : > { %1935 = vmatmul.mubr.bf16.gmra.mxu0 %v2530_v3  ;;  %2096 = vmatmul.mubr.bf16.gmra.mxu1 %v2532_v4  ;;  %v2573_v3 = vcombine.high %v471_v58, %v475_v59 }
 0x18c   : > { %1942 = vmatprep.mubr.bf16.mxu0 %v2539_v5  ;;  %2103 = vmatprep.mubr.bf16.mxu1 %v2541_v6 }
 0x193   : > { %v1558_v15 = vpop.f32.mrf.mxu0  ;;  %1943 = vmatmul.mubr.bf16.gmra.mxu0 %v2538_v11  ;;  %v1719_v16 = vpop.f32.mrf.mxu1  ;;  %2104 = vmatmul.mubr.bf16.gmra.mxu1 %v2540_v12  ;;  %v479_v12 = vld [vmem:[%s3342_s24 + $0x358] sm:$0xff] }
 0x194   : > { %1950 = vmatprep.mubr.bf16.mxu0 %v2547_v13  ;;  %v3552_v17 = vadd.f32 %v1719_v16, %v1558_v15  ;;  %2111 = vmatprep.mubr.bf16.mxu1 %v2549_v14  ;;  %v483_v13 = vld [vmem:[%s3342_s24 + $0x378] sm:$0xff]  ;;  %v2570_v15 = vcombine.low %v470_v55, %v474_v56 }
 0x195   : > { %v1560_v18 = vpop.f32.mrf.mxu0  ;;  %v1721_v21 = vpop.f32.mrf.mxu1  ;;  %v2581_v22 = vcombine.high %v479_v12, %v483_v13  ;;  %v2580_v38 = vcombine.low %v479_v12, %v483_v13 }
 0x196   : > { %v2572_v18 = vcombine.low %v471_v58, %v475_v59 }
 0x197   : > { %v1561_v28 = vpop.f32.mrf.mxu0  ;;  %v1722_v30 = vpop.f32.mrf.mxu1 }
 0x198   : > { %v3558_v24 = vadd.f32 %v1722_v30, %v1561_v28 }
 0x199   : > { %v1563_v25 = vpop.f32.mrf.mxu0  ;;  %v1724_v32 = vpop.f32.mrf.mxu1 }
 0x19a   : > { %v490_v25 = vld [vmem:[%s3342_s24 + $0x3b0] sm:$0xff]  ;;  %v487_v32 = vld [vmem:[%s3342_s24 + $0x398] sm:$0xff] }
 0x19b   : > { %v1566_v33 = vpop.f32.mrf.mxu0  ;;  %1951 = vmatmul.mubr.bf16.gmra.mxu0 %v2546_v29  ;;  %v1727_v34 = vpop.f32.mrf.mxu1  ;;  %2112 = vmatmul.mubr.bf16.gmra.mxu1 %v2548_v31 }
 0x19c   : > { %1958 = vmatprep.mubr.bf16.mxu0 %v2555_v23  ;;  %v3560_v35 = vadd.f32 %v1727_v34, %v1566_v33  ;;  %2119 = vmatprep.mubr.bf16.mxu1 %v2557_v26  ;;  %v486_v23 = vld [vmem:[%s3342_s24 + $0x390] sm:$0xff]  ;;  %v491_v33 = vld [vmem:[%s3342_s24 + $0x3b8] sm:$0xff] }
 0x19d   : > { %v1568_v36 = vpop.f32.mrf.mxu0  ;;  %v1729_v39 = vpop.f32.mrf.mxu1  ;;  %v2586_v56 = vcombine.low %v486_v23, %v490_v25  ;;  %v2588_v58 = vcombine.low %v487_v32, %v491_v33 }
 0x19e   : > { %v2578_v36 = vcombine.low %v478_v9, %v482_v10  ;;  %v2587_v39 = vcombine.high %v486_v23, %v490_v25 }
 0x19f   : > { %v1569_v42 = vpop.f32.mrf.mxu0  ;;  %v1730_v44 = vpop.f32.mrf.mxu1 }
 0x1a0   : > { %v3566_v47 = vadd.f32 %v1730_v44, %v1569_v42  ;;  %v2589_v42 = vcombine.high %v487_v32, %v491_v33 }
 0x1a1   : > { %v1571_v48 = vpop.f32.mrf.mxu0  ;;  %v1732_v50 = vpop.f32.mrf.mxu1 }
 0x1a2   : > { %v498_v50 = vld [vmem:[%s3342_s24 + $0x3f0] sm:$0xff] }
 0x1a3   : > { %v1574_v51 = vpop.f32.mrf.mxu0  ;;  %1959 = vmatmul.mubr.bf16.gmra.mxu0 %v2554_v43  ;;  %v1735_v52 = vpop.f32.mrf.mxu1  ;;  %2120 = vmatmul.mubr.bf16.gmra.mxu1 %v2556_v45 }
 0x1a4   : > { %1966 = vmatprep.mubr.bf16.mxu0 %v2563_v46  ;;  %v3568_v53 = vadd.f32 %v1735_v52, %v1574_v51  ;;  %2127 = vmatprep.mubr.bf16.mxu1 %v2565_v49  ;;  %v494_v49 = vld [vmem:[%s3342_s24 + $0x3d0] sm:$0xff]  ;;  %v495_v52 = vld [vmem:[%s3342_s24 + $0x3d8] sm:$0xff] }
 0x1a5   : > { %v1576_v54 = vpop.f32.mrf.mxu0  ;;  %v1737_v57 = vpop.f32.mrf.mxu1  ;;  %v2595_v59 = vcombine.high %v494_v49, %v498_v50 }
 0x1a6   : > { %v499_v54 = vld [vmem:[%s3342_s24 + $0x3f8] sm:$0xff] }
 0x1a7   : > { %v1577_v60 = vpop.f32.mrf.mxu0  ;;  %v1738_v62 = vpop.f32.mrf.mxu1  ;;  %v2596_v10 = vcombine.low %v495_v52, %v499_v54 }
 0x1a8   : > { %v3574_v1 = vadd.f32 %v1738_v62, %v1577_v60  ;;  %v2597_v62 = vcombine.high %v495_v52, %v499_v54 }
 0x1a9   : > { %v1579_v2 = vpop.f32.mrf.mxu0  ;;  %v1740_v4 = vpop.f32.mrf.mxu1 }
 0x1ab   : > { %v1582_v5 = vpop.f32.mrf.mxu0  ;;  %1967 = vmatmul.mubr.bf16.gmra.mxu0 %v2562_v61  ;;  %v1743_v6 = vpop.f32.mrf.mxu1  ;;  %2128 = vmatmul.mubr.bf16.gmra.mxu1 %v2564_v63 }
 0x1ac   : > { %1974 = vmatprep.mubr.bf16.mxu0 %v2571_v0  ;;  %v3576_v7 = vadd.f32 %v1743_v6, %v1582_v5  ;;  %2135 = vmatprep.mubr.bf16.mxu1 %v2573_v3 }
 0x1ad   : > { %v1584_v8 = vpop.f32.mrf.mxu0  ;;  %v1745_v11 = vpop.f32.mrf.mxu1 }
 0x1ae   : > { %v2594_v8 = vcombine.low %v494_v49, %v498_v50 }
 0x1af   : > { %v1585_v14 = vpop.f32.mrf.mxu0  ;;  %v1746_v16 = vpop.f32.mrf.mxu1 }
 0x1b0   : > { %v3582_v20 = vadd.f32 %v1746_v16, %v1585_v14 }
 0x1b1   : > { %v1587_v21 = vpop.f32.mrf.mxu0  ;;  %v1748_v27 = vpop.f32.mrf.mxu1 }
 0x1b3   : > { %v1590_v28 = vpop.f32.mrf.mxu0  ;;  %1975 = vmatmul.mubr.bf16.gmra.mxu0 %v2570_v15  ;;  %v1751_v29 = vpop.f32.mrf.mxu1  ;;  %2136 = vmatmul.mubr.bf16.gmra.mxu1 %v2572_v18 }
 0x1b4   : > { %1982 = vmatprep.mubr.bf16.mxu0 %v2579_v19  ;;  %v3584_v30 = vadd.f32 %v1751_v29, %v1590_v28  ;;  %2143 = vmatprep.mubr.bf16.mxu1 %v2581_v22 }
 0x1b5   : > { %v1592_v31 = vpop.f32.mrf.mxu0  ;;  %v1753_v26 = vpop.f32.mrf.mxu1 }
 0x1b7   : > { %v1593_v34 = vpop.f32.mrf.mxu0  ;;  %v1754_v37 = vpop.f32.mrf.mxu1 }
 0x1b8   : > { %v3590_v40 = vadd.f32 %v1754_v37, %v1593_v34 }
 0x1b9   : > { %v1595_v41 = vpop.f32.mrf.mxu0  ;;  %v1756_v43 = vpop.f32.mrf.mxu1 }
 0x1bb   : > { %v1598_v44 = vpop.f32.mrf.mxu0  ;;  %1983 = vmatmul.mubr.bf16.gmra.mxu0 %v2578_v36  ;;  %v1759_v45 = vpop.f32.mrf.mxu1  ;;  %2144 = vmatmul.mubr.bf16.gmra.mxu1 %v2580_v38 }
 0x1bc   : > { %1990 = vmatprep.mubr.bf16.mxu0 %v2587_v39  ;;  %v3592_v46 = vadd.f32 %v1759_v45, %v1598_v44  ;;  %2151 = vmatprep.mubr.bf16.mxu1 %v2589_v42 }
 0x1bd   : > { %v1600_v48 = vpop.f32.mrf.mxu0  ;;  %v1761_v51 = vpop.f32.mrf.mxu1 }
 0x1bf   : > { %v1601_v55 = vpop.f32.mrf.mxu0  ;;  %v1762_v57 = vpop.f32.mrf.mxu1 }
 0x1c0   : > { %v3598_v60 = vadd.f32 %v1762_v57, %v1601_v55 }
 0x1c1   : > { %v1603_v61 = vpop.f32.mrf.mxu0  ;;  %v1764_v63 = vpop.f32.mrf.mxu1 }
 0x1c3   : > { %v1606_v0 = vpop.f32.mrf.mxu0  ;;  %1991 = vmatmul.mubr.bf16.gmra.mxu0 %v2586_v56  ;;  %v1767_v2 = vpop.f32.mrf.mxu1  ;;  %2152 = vmatmul.mubr.bf16.gmra.mxu1 %v2588_v58 }
 0x1c4   : > { %1998 = vmatprep.mubr.bf16.mxu0 %v2595_v59  ;;  %v3600_v3 = vadd.f32 %v1767_v2, %v1606_v0  ;;  %2159 = vmatprep.mubr.bf16.mxu1 %v2597_v62 }
 0x1c5   : > { %v1608_v4 = vpop.f32.mrf.mxu0  ;;  %v1769_v5 = vpop.f32.mrf.mxu1 }
 0x1c7   : > { %v1609_v6 = vpop.f32.mrf.mxu0  ;;  %v1770_v9 = vpop.f32.mrf.mxu1 }
 0x1c8   : > { %v3602_v11 = vadd.f32 %v1770_v9, %v1609_v6 }
 0x1c9   : > { %v1611_v12 = vpop.f32.mrf.mxu0  ;;  %v1772_v13 = vpop.f32.mrf.mxu1 }
 0x1cb   : > { %v1614_v14 = vpop.f32.mrf.mxu0  ;;  %1999 = vmatmul.mubr.bf16.gmra.mxu0 %v2594_v8  ;;  %v1775_v15 = vpop.f32.mrf.mxu1  ;;  %2160 = vmatmul.mubr.bf16.gmra.mxu1 %v2596_v10 }
 0x1cc   : > { %v3604_v16 = vadd.f32 %v1775_v15, %v1614_v14 }
 0x1cd   : > { %v1616_v18 = vpop.f32.mrf.mxu0  ;;  %v1777_v19 = vpop.f32.mrf.mxu1 }
 0x1cf   : > { %v1617_v21 = vpop.f32.mrf.mxu0  ;;  %v1778_v22 = vpop.f32.mrf.mxu1 }
 0x1d0   : > { %v3606_v27 = vadd.f32 %v1778_v22, %v1617_v21 }
 0x1d1   : > { %v1619_v28 = vpop.f32.mrf.mxu0  ;;  %v1780_v29 = vpop.f32.mrf.mxu1 }
 0x1d3   : > { %v1622_v31 = vpop.f32.mrf.mxu0  ;;  %v1783_v23 = vpop.f32.mrf.mxu1 }
 0x1d4   : > { %v3608_v25 = vadd.f32 %v1783_v23, %v1622_v31 }
 0x1d5   : > { %v1624_v26 = vpop.f32.mrf.mxu0  ;;  %v1785_v32 = vpop.f32.mrf.mxu1 }
 0x1d7   : > { %v1625_v33 = vpop.f32.mrf.mxu0  ;;  %v1786_v34 = vpop.f32.mrf.mxu1 }
 0x1d8   : > { %v3610_v36 = vadd.f32 %v1786_v34, %v1625_v33 }
 0x1d9   : > { %v1627_v37 = vpop.f32.mrf.mxu0  ;;  %v1788_v38 = vpop.f32.mrf.mxu1 }
 0x1db   : > { %v1630_v39 = vpop.f32.mrf.mxu0  ;;  %v1791_v41 = vpop.f32.mrf.mxu1 }
 0x1dc   : > { %v3612_v42 = vadd.f32 %v1791_v41, %v1630_v39 }
 0x1dd   : > { %v1632_v43 = vpop.f32.mrf.mxu0  ;;  %v1793_v44 = vpop.f32.mrf.mxu1 }
 0x1df   : > { %v1633_v45 = vpop.f32.mrf.mxu0  ;;  %v1794_v48 = vpop.f32.mrf.mxu1 }
 0x1e0   : > { %v3614_v49 = vadd.f32 %v1794_v48, %v1633_v45 }
 0x1e1   : > { %v1635_v50 = vpop.f32.mrf.mxu0  ;;  %v1796_v51 = vpop.f32.mrf.mxu1 }
 0x1e3   : > { %v1638_v52 = vpop.f32.mrf.mxu0  ;;  %v1799_v54 = vpop.f32.mrf.mxu1 }
 0x1e4   : > { %v3616_v55 = vadd.f32 %v1799_v54, %v1638_v52 }
 0x1e5   : > { %v1640_v56 = vpop.f32.mrf.mxu0  ;;  %v1801_v57 = vpop.f32.mrf.mxu1 }
 0x1e7   : > { %v1641_v58 = vpop.f32.mrf.mxu0  ;;  %v1802_v59 = vpop.f32.mrf.mxu1 }
 0x1e8   : > { %v3618_v61 = vadd.f32 %v1802_v59, %v1641_v58 }
 0x1e9   : > { %v1643_v62 = vpop.f32.mrf.mxu0  ;;  %v1804_v63 = vpop.f32.mrf.mxu1 }
 0x1eb   : > { %v1646_v0 = vpop.f32.mrf.mxu0  ;;  %v1807_v2 = vpop.f32.mrf.mxu1 }
 0x1ec   : > { %v3620_v4 = vadd.f32 %v1807_v2, %v1646_v0 }
 0x1ed   : > { %v1648_v5 = vpop.f32.mrf.mxu0  ;;  %v1809_v6 = vpop.f32.mrf.mxu1 }
 0x1ef   : > { %v1649_v8 = vpop.f32.mrf.mxu0  ;;  %v1810_v9 = vpop.f32.mrf.mxu1 }
 0x1f0   : > { %v3622_v10 = vadd.f32 %v1810_v9, %v1649_v8 }
 0x1f1   : > { %v1651_v12 = vpop.f32.mrf.mxu0  ;;  %v1812_v13 = vpop.f32.mrf.mxu1 }
 0x1f3   : > { %v1654_v14 = vpop.f32.mrf.mxu0  ;;  %v1815_v15 = vpop.f32.mrf.mxu1 }
 0x1f4   : > { %v3624_v18 = vadd.f32 %v1815_v15, %v1654_v14 }
 0x1f5   : > { %v1656_v19 = vpop.f32.mrf.mxu0  ;;  %v1817_v21 = vpop.f32.mrf.mxu1 }
 0x1f6   : > { %v340_v21 = vld [vmem:[#allocation2 + $0xb0] sm:$0xff] }
 0x1f7   : > { %v1657_v22 = vpop.f32.mrf.mxu0  ;;  %v1818_v28 = vpop.f32.mrf.mxu1 }
 0x1f8   : > { %v3626_v29 = vadd.f32 %v1818_v28, %v1657_v22 }
 0x1f9   : > { %v1659_v31 = vpop.f32.mrf.mxu0  ;;  %v1820_v23 = vpop.f32.mrf.mxu1 }
 0x1fb   : > { %v1662_v26 = vpop.f32.mrf.mxu0  ;;  %v1823_v32 = vpop.f32.mrf.mxu1 }
 0x1fc   : > { %v3628_v33 = vadd.f32 %v1823_v32, %v1662_v26 }
 0x1fd   : > { %v1664_v34 = vpop.f32.mrf.mxu0  ;;  %v1825_v37 = vpop.f32.mrf.mxu1 }
 0x1fe   : > { %v341_v37 = vld [vmem:[#allocation2] sm:$0xff] }
 0x1ff   : > { %v1665_v38 = vpop.f32.mrf.mxu0  ;;  %v1826_v39 = vpop.f32.mrf.mxu1 }
 0x200   : > { %v3630_v41 = vadd.f32 %v1826_v39, %v1665_v38 }
 0x201   : > { %v1667_v43 = vpop.f32.mrf.mxu0  ;;  %v1828_v44 = vpop.f32.mrf.mxu1 }
 0x203   : > { %v1670_v45 = vpop.f32.mrf.mxu0  ;;  %v1831_v48 = vpop.f32.mrf.mxu1 }
 0x204   : > { %v3632_v50 = vadd.f32 %v1831_v48, %v1670_v45 }
 0x205   : > { %v1672_v51 = vpop.f32.mrf.mxu0  ;;  %v1833_v52 = vpop.f32.mrf.mxu1 }
 0x206   : > { %v342_v51 = vld [vmem:[#allocation2 + $0xd8] sm:$0xff] }
 0x207   : > { %v1673_v54 = vpop.f32.mrf.mxu0  ;;  %v1834_v56 = vpop.f32.mrf.mxu1 }
 0x208   : > { %v3634_v57 = vadd.f32 %v1834_v56, %v1673_v54 }
 0x209   : > { %v1675_v58 = vpop.f32.mrf.mxu0  ;;  %v1836_v59 = vpop.f32.mrf.mxu1 }
 0x20b   : > { %v1678_v62 = vpop.f32.mrf.mxu0  ;;  %v1839_v63 = vpop.f32.mrf.mxu1 }
 0x20c   : > { %v3636_v0 = vadd.f32 %v1839_v63, %v1678_v62  ;;  %v343_v63 = vld [vmem:[#allocation2 + $0x18] sm:$0xff] }
 0x20d   : > { %v1680_v2 = vpop.f32.mrf.mxu0  ;;  %v1841_v5 = vpop.f32.mrf.mxu1 }
 0x20f   : > { %v1681_v6 = vpop.f32.mrf.mxu0  ;;  %v1842_v8 = vpop.f32.mrf.mxu1 }
 0x210   : > { %v3638_v9 = vadd.f32 %v1842_v8, %v1681_v6 }
 0x211   : > { %v1683_v12 = vpop.f32.mrf.mxu0  ;;  %v1844_v13 = vpop.f32.mrf.mxu1 }
 0x213   : > { %v1880_v14 = vpop.f32.mrf.mxu0  ;;  %v2041_v19 = vpop.f32.mrf.mxu1 }
 0x214   : > { %v1881_v15 = vadd.f32 %v1880_v14, %v3552_v17  ;;  %v344_v14 = vld [vmem:[#allocation2 + $0x50] sm:$0xff] }
 0x215   : > { %v1882_v22 = vpop.f32.mrf.mxu0  ;;  %v2043_v31 = vpop.f32.mrf.mxu1 }
 0x216   : > { %v2042_v28 = vadd.f32 %v2041_v19, %v1881_v15 }
 0x217   : > { %v1883_v23 = vpop.f32.mrf.mxu0  ;;  %v2044_v34 = vpop.f32.mrf.mxu1 }
 0x218   : > { %v2168_v26 = vadd.f32 %v2042_v28, %v340_v21  ;;  %v1884_v32 = vadd.f32 %v1883_v23, %v3558_v24  ;;  %v345_v23 = vld [vmem:[#allocation2 + $0x68] sm:$0xff] }
 0x219   : > { %v1885_v38 = vpop.f32.mrf.mxu0  ;;  %v2046_v43 = vpop.f32.mrf.mxu1 }
 0x21a   : > { %2200 = vst [vmem:[#allocation2 + $0xb0] sm:$0xff] %v2168_v26  ;;  %v2045_v39 = vadd.f32 %v2044_v34, %v1884_v32  ;;  %v346_v43 = vld [vmem:[#allocation2 + $0x30] sm:$0xff] }
 0x21b   : > { %v1888_v44 = vpop.f32.mrf.mxu0  ;;  %v2049_v17 = vpop.f32.mrf.mxu1 }
 0x21c   : > { %v2169_v45 = vadd.f32 %v2045_v39, %v341_v37  ;;  %v1889_v48 = vadd.f32 %v1888_v44, %v3560_v35 }
 0x21d   : > { %v1890_v52 = vpop.f32.mrf.mxu0  ;;  %v2051_v56 = vpop.f32.mrf.mxu1 }
 0x21e   : > { %2201 = vst [vmem:[#allocation2] sm:$0xff] %v2169_v45  ;;  %v2050_v54 = vadd.f32 %v2049_v17, %v1889_v48 }
 0x21f   : > { %v1891_v58 = vpop.f32.mrf.mxu0  ;;  %v2052_v62 = vpop.f32.mrf.mxu1 }
 0x220   : > { %v2170_v59 = vadd.f32 %v2050_v54, %v342_v51  ;;  %v1892_v24 = vadd.f32 %v1891_v58, %v3566_v47  ;;  %v347_v54 = vld [vmem:[#allocation2 + $0x48] sm:$0xff] }
 0x221   : > { %v1893_v2 = vpop.f32.mrf.mxu0  ;;  %v2054_v6 = vpop.f32.mrf.mxu1 }
 0x222   : > { %2202 = vst [vmem:[#allocation2 + $0xd8] sm:$0xff] %v2170_v59  ;;  %v2053_v5 = vadd.f32 %v2052_v62, %v1892_v24  ;;  %v348_v2 = vld [vmem:[#allocation2 + $0x80] sm:$0xff] }
 0x223   : > { %v1896_v8 = vpop.f32.mrf.mxu0  ;;  %v2057_v13 = vpop.f32.mrf.mxu1 }
 0x224   : > { %v2171_v12 = vadd.f32 %v2053_v5, %v343_v63  ;;  %v1897_v35 = vadd.f32 %v1896_v8, %v3568_v53 }
 0x225   : > { %v1898_v15 = vpop.f32.mrf.mxu0  ;;  %v2059_v21 = vpop.f32.mrf.mxu1 }
 0x226   : > { %2203 = vst [vmem:[#allocation2 + $0x18] sm:$0xff] %v2171_v12  ;;  %v2058_v19 = vadd.f32 %v2057_v13, %v1897_v35 }
 0x227   : > { %v1899_v22 = vpop.f32.mrf.mxu0  ;;  %v2060_v31 = vpop.f32.mrf.mxu1 }
 0x228   : > { %v2172_v28 = vadd.f32 %v2058_v19, %v344_v14  ;;  %v1900_v47 = vadd.f32 %v1899_v22, %v3574_v1  ;;  %v349_v14 = vld [vmem:[#allocation2 + $0x88] sm:$0xff] }
 0x229   : > { %v1901_v26 = vpop.f32.mrf.mxu0  ;;  %v2062_v34 = vpop.f32.mrf.mxu1 }
 0x22a   : > { %2204 = vst [vmem:[#allocation2 + $0x50] sm:$0xff] %v2172_v28  ;;  %v2061_v32 = vadd.f32 %v2060_v31, %v1900_v47  ;;  %v350_v31 = vld [vmem:[#allocation2 + $0xe8] sm:$0xff] }
 0x22b   : > { %v1904_v37 = vpop.f32.mrf.mxu0  ;;  %v2065_v39 = vpop.f32.mrf.mxu1 }
 0x22c   : > { %v2173_v38 = vadd.f32 %v2061_v32, %v345_v23  ;;  %v1905_v53 = vadd.f32 %v1904_v37, %v3576_v7 }
 0x22d   : > { %v1906_v44 = vpop.f32.mrf.mxu0  ;;  %v2067_v48 = vpop.f32.mrf.mxu1 }
 0x22e   : > { %2205 = vst [vmem:[#allocation2 + $0x68] sm:$0xff] %v2173_v38  ;;  %v2066_v45 = vadd.f32 %v2065_v39, %v1905_v53  ;;  %v351_v53 = vld [vmem:[#allocation2 + $0xb8] sm:$0xff] }
 0x22f   : > { %v1907_v17 = vpop.f32.mrf.mxu0  ;;  %v2068_v52 = vpop.f32.mrf.mxu1 }
 0x230   : > { %v2174_v51 = vadd.f32 %v2066_v45, %v346_v43  ;;  %v1908_v1 = vadd.f32 %v1907_v17, %v3582_v20 }
 0x231   : > { %v1909_v56 = vpop.f32.mrf.mxu0  ;;  %v2070_v59 = vpop.f32.mrf.mxu1 }
 0x232   : > { %2206 = vst [vmem:[#allocation2 + $0x30] sm:$0xff] %v2174_v51  ;;  %v2069_v58 = vadd.f32 %v2068_v52, %v1908_v1  ;;  %v352_v51 = vld [vmem:[#allocation2 + $0x60] sm:$0xff] }
 0x233   : > { %v1912_v24 = vpop.f32.mrf.mxu0  ;;  %v2073_v63 = vpop.f32.mrf.mxu1 }
 0x234   : > { %v2175_v62 = vadd.f32 %v2069_v58, %v347_v54  ;;  %v1913_v7 = vadd.f32 %v1912_v24, %v3584_v30  ;;  %v353_v24 = vld [vmem:[#allocation2 + $0xf0] sm:$0xff] }
 0x235   : > { %v1914_v5 = vpop.f32.mrf.mxu0  ;;  %v2075_v8 = vpop.f32.mrf.mxu1 }
 0x236   : > { %2207 = vst [vmem:[#allocation2 + $0x48] sm:$0xff] %v2175_v62  ;;  %v2074_v6 = vadd.f32 %v2073_v63, %v1913_v7  ;;  %v354_v8 = vld [vmem:[#allocation2 + $0x8] sm:$0xff] }
 0x237   : > { %v1915_v12 = vpop.f32.mrf.mxu0  ;;  %v2076_v13 = vpop.f32.mrf.mxu1 }
 0x238   : > { %v2176_v35 = vadd.f32 %v2074_v6, %v348_v2  ;;  %v1916_v20 = vadd.f32 %v1915_v12, %v3590_v40 }
 0x239   : > { %v1917_v15 = vpop.f32.mrf.mxu0  ;;  %v2078_v21 = vpop.f32.mrf.mxu1 }
 0x23a   : > { %2208 = vst [vmem:[#allocation2 + $0x80] sm:$0xff] %v2176_v35  ;;  %v2077_v19 = vadd.f32 %v2076_v13, %v1916_v20 }
 0x23b   : > { %v1920_v22 = vpop.f32.mrf.mxu0  ;;  %v2081_v47 = vpop.f32.mrf.mxu1 }
 0x23c   : > { %v2177_v28 = vadd.f32 %v2077_v19, %v349_v14  ;;  %v1921_v30 = vadd.f32 %v1920_v22, %v3592_v46  ;;  %v355_v19 = vld [vmem:[#allocation2 + $0x78] sm:$0xff] }
 0x23d   : > { %v1922_v23 = vpop.f32.mrf.mxu0  ;;  %v2083_v32 = vpop.f32.mrf.mxu1 }
 0x23e   : > { %2209 = vst [vmem:[#allocation2 + $0x88] sm:$0xff] %v2177_v28  ;;  %v2082_v26 = vadd.f32 %v2081_v47, %v1921_v30  ;;  %v356_v23 = vld [vmem:[#allocation2 + $0x38] sm:$0xff] }
 0x23f   : > { %v1923_v34 = vpop.f32.mrf.mxu0  ;;  %v2084_v38 = vpop.f32.mrf.mxu1 }
 0x240   : > { %v2178_v37 = vadd.f32 %v2082_v26, %v350_v31  ;;  %v1924_v40 = vadd.f32 %v1923_v34, %v3598_v60 }
 0x241   : > { %v1925_v39 = vpop.f32.mrf.mxu0  ;;  %v2086_v44 = vpop.f32.mrf.mxu1 }
 0x242   : > { %2210 = vst [vmem:[#allocation2 + $0xe8] sm:$0xff] %v2178_v37  ;;  %v2085_v43 = vadd.f32 %v2084_v38, %v1924_v40 }
 0x243   : > { %v1928_v45 = vpop.f32.mrf.mxu0  ;;  %v2089_v17 = vpop.f32.mrf.mxu1 }
 0x244   : > { %v2179_v48 = vadd.f32 %v2085_v43, %v351_v53  ;;  %v1929_v46 = vadd.f32 %v1928_v45, %v3600_v3  ;;  %v357_v53 = vld [vmem:[#allocation2 + $0x58] sm:$0xff] }
 0x245   : > { %v1930_v1 = vpop.f32.mrf.mxu0  ;;  %v2091_v54 = vpop.f32.mrf.mxu1 }
 0x246   : > { %2211 = vst [vmem:[#allocation2 + $0xb8] sm:$0xff] %v2179_v48  ;;  %v2090_v52 = vadd.f32 %v2089_v17, %v1929_v46  ;;  %v358_v17 = vld [vmem:[#allocation2 + $0x40] sm:$0xff] }
 0x247   : > { %v1931_v56 = vpop.f32.mrf.mxu0  ;;  %v2092_v59 = vpop.f32.mrf.mxu1 }
 0x248   : > { %v2180_v58 = vadd.f32 %v2090_v52, %v352_v51  ;;  %v1932_v60 = vadd.f32 %v1931_v56, %v3602_v11 }
 0x249   : > { %v1933_v62 = vpop.f32.mrf.mxu0  ;;  %v2094_v63 = vpop.f32.mrf.mxu1 }
 0x24a   : > { %2212 = vst [vmem:[#allocation2 + $0x60] sm:$0xff] %v2180_v58  ;;  %v2093_v7 = vadd.f32 %v2092_v59, %v1932_v60  ;;  %v359_v60 = vld [vmem:[#allocation2 + $0xc8] sm:$0xff] }
 0x24b   : > { %v1936_v2 = vpop.f32.mrf.mxu0  ;;  %v2097_v6 = vpop.f32.mrf.mxu1 }
 0x24c   : > { %v2181_v5 = vadd.f32 %v2093_v7, %v353_v24  ;;  %v1937_v3 = vadd.f32 %v1936_v2, %v3604_v16 }
 0x24d   : > { %v1938_v12 = vpop.f32.mrf.mxu0  ;;  %v2099_v20 = vpop.f32.mrf.mxu1 }
 0x24e   : > { %2213 = vst [vmem:[#allocation2 + $0xf0] sm:$0xff] %v2181_v5  ;;  %v2098_v35 = vadd.f32 %v2097_v6, %v1937_v3  ;;  %v360_v5 = vld [vmem:[#allocation2 + $0xe0] sm:$0xff] }
 0x24f   : > { %v1939_v13 = vpop.f32.mrf.mxu0  ;;  %v2100_v15 = vpop.f32.mrf.mxu1 }
 0x250   : > { %v2182_v14 = vadd.f32 %v2098_v35, %v354_v8  ;;  %v1940_v11 = vadd.f32 %v1939_v13, %v3606_v27  ;;  %v361_v13 = vld [vmem:[#allocation2 + $0x90] sm:$0xff] }
 0x251   : > { %v1941_v21 = vpop.f32.mrf.mxu0  ;;  %v2102_v28 = vpop.f32.mrf.mxu1 }
 0x252   : > { %2214 = vst [vmem:[#allocation2 + $0x8] sm:$0xff] %v2182_v14  ;;  %v2101_v22 = vadd.f32 %v2100_v15, %v1940_v11  ;;  %v362_v28 = vld [vmem:[#allocation2 + $0x70] sm:$0xff] }
 0x253   : > { %v1944_v30 = vpop.f32.mrf.mxu0  ;;  %v2105_v31 = vpop.f32.mrf.mxu1 }
 0x254   : > { %v2183_v47 = vadd.f32 %v2101_v22, %v355_v19  ;;  %v1945_v16 = vadd.f32 %v1944_v30, %v3608_v25 }
 0x255   : > { %v1946_v26 = vpop.f32.mrf.mxu0  ;;  %v2107_v34 = vpop.f32.mrf.mxu1 }
 0x256   : > { %2215 = vst [vmem:[#allocation2 + $0x78] sm:$0xff] %v2183_v47  ;;  %v2106_v32 = vadd.f32 %v2105_v31, %v1945_v16 }
 0x257   : > { %v1947_v37 = vpop.f32.mrf.mxu0  ;;  %v2108_v38 = vpop.f32.mrf.mxu1 }
 0x258   : > { %v2184_v40 = vadd.f32 %v2106_v32, %v356_v23  ;;  %v1948_v27 = vadd.f32 %v1947_v37, %v3610_v36  ;;  %v363_v32 = vld [vmem:[#allocation2 + $0xc0] sm:$0xff] }
 0x259   : > { %v1949_v39 = vpop.f32.mrf.mxu0  ;;  %v2110_v44 = vpop.f32.mrf.mxu1 }
 0x25a   : > { %2216 = vst [vmem:[#allocation2 + $0x38] sm:$0xff] %v2184_v40  ;;  %v2109_v43 = vadd.f32 %v2108_v38, %v1948_v27  ;;  %v364_v39 = vld [vmem:[#allocation2 + $0xa8] sm:$0xff] }
 0x25b   : > { %v1952_v45 = vpop.f32.mrf.mxu0  ;;  %v2113_v46 = vpop.f32.mrf.mxu1 }
 0x25c   : > { %v2185_v48 = vadd.f32 %v2109_v43, %v357_v53  ;;  %v1953_v25 = vadd.f32 %v1952_v45, %v3612_v42 }
 0x25d   : > { %v1954_v51 = vpop.f32.mrf.mxu0  ;;  %v2115_v52 = vpop.f32.mrf.mxu1 }
 0x25e   : > { %2217 = vst [vmem:[#allocation2 + $0x58] sm:$0xff] %v2185_v48  ;;  %v2114_v1 = vadd.f32 %v2113_v46, %v1953_v25 }
 0x25f   : > { %v1955_v54 = vpop.f32.mrf.mxu0  ;;  %v2116_v58 = vpop.f32.mrf.mxu1 }
 0x260   : > { %v2186_v56 = vadd.f32 %v2114_v1, %v358_v17  ;;  %v1956_v36 = vadd.f32 %v1955_v54, %v3614_v49  ;;  %v365_v17 = vld [vmem:[#allocation2 + $0xd0] sm:$0xff] }
 0x261   : > { %v1957_v59 = vpop.f32.mrf.mxu0  ;;  %v2118_v62 = vpop.f32.mrf.mxu1 }
 0x262   : > { %2218 = vst [vmem:[#allocation2 + $0x40] sm:$0xff] %v2186_v56  ;;  %v2117_v24 = vadd.f32 %v2116_v58, %v1956_v36  ;;  %v366_v58 = vld [vmem:[#allocation2 + $0x10] sm:$0xff] }
 0x263   : > { %v1960_v7 = vpop.f32.mrf.mxu0  ;;  %v2121_v2 = vpop.f32.mrf.mxu1 }
 0x264   : > { %v2187_v63 = vadd.f32 %v2117_v24, %v359_v60  ;;  %v1961_v42 = vadd.f32 %v1960_v7, %v3616_v55 }
 0x265   : > { %v1962_v3 = vpop.f32.mrf.mxu0  ;;  %v2123_v8 = vpop.f32.mrf.mxu1 }
 0x266   : > { %2219 = vst [vmem:[#allocation2 + $0xc8] sm:$0xff] %v2187_v63  ;;  %v2122_v6 = vadd.f32 %v2121_v2, %v1961_v42  ;;  %v367_v42 = vld [vmem:[#allocation2 + $0x28] sm:$0xff] }
 0x267   : > { %v1963_v12 = vpop.f32.mrf.mxu0  ;;  %v2124_v20 = vpop.f32.mrf.mxu1 }
 0x268   : > { %v2188_v35 = vadd.f32 %v2122_v6, %v360_v5  ;;  %v1964_v49 = vadd.f32 %v1963_v12, %v3618_v61 }
 0x269   : > { %v1965_v14 = vpop.f32.mrf.mxu0  ;;  %v2126_v15 = vpop.f32.mrf.mxu1 }
 0x26a   : > { %2220 = vst [vmem:[#allocation2 + $0xe0] sm:$0xff] %v2188_v35  ;;  %v2125_v11 = vadd.f32 %v2124_v20, %v1964_v49  ;;  %v368_v35 = vld [vmem:[#allocation2 + $0xa0] sm:$0xff] }
 0x26b   : > { %v1968_v19 = vpop.f32.mrf.mxu0  ;;  %v2129_v22 = vpop.f32.mrf.mxu1 }
 0x26c   : > { %v2189_v21 = vadd.f32 %v2125_v11, %v361_v13  ;;  %v1969_v55 = vadd.f32 %v1968_v19, %v3620_v4  ;;  %v369_v19 = vld [vmem:[#allocation2 + $0xf8] sm:$0xff] }
 0x26d   : > { %v1970_v30 = vpop.f32.mrf.mxu0  ;;  %v2131_v16 = vpop.f32.mrf.mxu1 }
 0x26e   : > { %2221 = vst [vmem:[#allocation2 + $0x90] sm:$0xff] %v2189_v21  ;;  %v2130_v47 = vadd.f32 %v2129_v22, %v1969_v55  ;;  %v370_v16 = vld [vmem:[#allocation2 + $0x20] sm:$0xff] }
 0x26f   : > { %v1971_v31 = vpop.f32.mrf.mxu0  ;;  %v2132_v26 = vpop.f32.mrf.mxu1 }
 0x270   : > { %v2190_v23 = vadd.f32 %v2130_v47, %v362_v28  ;;  %v1972_v61 = vadd.f32 %v1971_v31, %v3622_v10 }
 0x271   : > { %v1973_v34 = vpop.f32.mrf.mxu0  ;;  %v2134_v40 = vpop.f32.mrf.mxu1 }
 0x272   : > { %2222 = vst [vmem:[#allocation2 + $0x70] sm:$0xff] %v2190_v23  ;;  %v2133_v37 = vadd.f32 %v2132_v26, %v1972_v61 }
 0x273   : > { %v1976_v27 = vpop.f32.mrf.mxu0  ;;  %v2137_v53 = vpop.f32.mrf.mxu1 }
 0x274   : > { %v2191_v38 = vadd.f32 %v2133_v37, %v363_v32  ;;  %v1977_v4 = vadd.f32 %v1976_v27, %v3624_v18  ;;  %v371_v37 = vld [vmem:[#allocation2 + $0x98] sm:$0xff] }
 0x275   : > { %v1978_v43 = vpop.f32.mrf.mxu0  ;;  %v2139_v45 = vpop.f32.mrf.mxu1 }
 0x276   : > { %2223 = vst [vmem:[#allocation2 + $0xc0] sm:$0xff] %v2191_v38  ;;  %v2138_v44 = vadd.f32 %v2137_v53, %v1977_v4 }
 0x277   : > { %v1979_v48 = vpop.f32.mrf.mxu0  ;;  %v2140_v46 = vpop.f32.mrf.mxu1 }
 0x278   : > { %v2192_v25 = vadd.f32 %v2138_v44, %v364_v39  ;;  %v1980_v10 = vadd.f32 %v1979_v48, %v3626_v29 }
 0x279   : > { %v1981_v51 = vpop.f32.mrf.mxu0  ;;  %v2142_v52 = vpop.f32.mrf.mxu1 }
 0x27a   : > { %2224 = vst [vmem:[#allocation2 + $0xa8] sm:$0xff] %v2192_v25  ;;  %v2141_v1 = vadd.f32 %v2140_v46, %v1980_v10 }
 0x27b   : > { %v1984_v54 = vpop.f32.mrf.mxu0  ;;  %v2145_v36 = vpop.f32.mrf.mxu1 }
 0x27c   : > { %v2193_v56 = vadd.f32 %v2141_v1, %v365_v17  ;;  %v1985_v18 = vadd.f32 %v1984_v54, %v3628_v33 }
 0x27d   : > { %v1986_v60 = vpop.f32.mrf.mxu0  ;;  %v2147_v24 = vpop.f32.mrf.mxu1 }
 0x27e   : > { %2225 = vst [vmem:[#allocation2 + $0xd0] sm:$0xff] %v2193_v56  ;;  %v2146_v59 = vadd.f32 %v2145_v36, %v1985_v18 }
 0x27f   : > { %v1987_v62 = vpop.f32.mrf.mxu0  ;;  %v2148_v63 = vpop.f32.mrf.mxu1 }
 0x280   : > { %v2194_v7 = vadd.f32 %v2146_v59, %v366_v58  ;;  %v1988_v29 = vadd.f32 %v1987_v62, %v3630_v41 }
 0x281   : > { %v1989_v2 = vpop.f32.mrf.mxu0  ;;  %v2150_v3 = vpop.f32.mrf.mxu1 }
 0x282   : > { %2226 = vst [vmem:[#allocation2 + $0x10] sm:$0xff] %v2194_v7  ;;  %v2149_v5 = vadd.f32 %v2148_v63, %v1988_v29 }
 0x283   : > { %v1992_v6 = vpop.f32.mrf.mxu0  ;;  %v2153_v12 = vpop.f32.mrf.mxu1 }
 0x284   : > { %v2195_v8 = vadd.f32 %v2149_v5, %v367_v42  ;;  %v1993_v33 = vadd.f32 %v1992_v6, %v3632_v50 }
 0x285   : > { %v1994_v49 = vpop.f32.mrf.mxu0  ;;  %v2155_v13 = vpop.f32.mrf.mxu1 }
 0x286   : > { %2227 = vst [vmem:[#allocation2 + $0x28] sm:$0xff] %v2195_v8  ;;  %v2154_v20 = vadd.f32 %v2153_v12, %v1993_v33 }
 0x287   : > { %v1995_v14 = vpop.f32.mrf.mxu0  ;;  %v2156_v15 = vpop.f32.mrf.mxu1 }
 0x288   : > { %v2196_v11 = vadd.f32 %v2154_v20, %v368_v35  ;;  %v1996_v41 = vadd.f32 %v1995_v14, %v3634_v57 }
 0x289   : > { %v1997_v21 = vpop.f32.mrf.mxu0  ;;  %v2158_v22 = vpop.f32.mrf.mxu1 }
 0x28a   : > { %2228 = vst [vmem:[#allocation2 + $0xa0] sm:$0xff] %v2196_v11  ;;  %v2157_v55 = vadd.f32 %v2156_v15, %v1996_v41 }
 0x28b   : > { %v2000_v28 = vpop.f32.mrf.mxu0  ;;  %v2161_v47 = vpop.f32.mrf.mxu1 }
 0x28c   : > { %v2197_v30 = vadd.f32 %v2157_v55, %v369_v19  ;;  %v2001_v50 = vadd.f32 %v2000_v28, %v3636_v0 }
 0x28d   : > { %v2002_v31 = vpop.f32.mrf.mxu0  ;;  %v2163_v61 = vpop.f32.mrf.mxu1 }
 0x28e   : > { %2229 = vst [vmem:[#allocation2 + $0xf8] sm:$0xff] %v2197_v30  ;;  %v2162_v23 = vadd.f32 %v2161_v47, %v2001_v50 }
 0x28f   : > { %v2003_v26 = vpop.f32.mrf.mxu0  ;;  %v2164_v34 = vpop.f32.mrf.mxu1 }
 0x290   : > { %v2198_v32 = vadd.f32 %v2162_v23, %v370_v16  ;;  %v2004_v57 = vadd.f32 %v2003_v26, %v3638_v9 }
 0x291   : > { %v2005_v40 = vpop.f32.mrf.mxu0  ;;  %v2166_v38 = vpop.f32.mrf.mxu1 }
 0x292   : > { %2230 = vst [vmem:[#allocation2 + $0x20] sm:$0xff] %v2198_v32  ;;  %v2165_v27 = vadd.f32 %v2164_v34, %v2004_v57  ;;  %2235 = sbr.rel (%p2662_p0) target bundleno = 680 (0x2a8), region = 52 }
 0x294   : > { %v2199_v4 = vadd.f32 %v2165_v27, %v371_v37 }
 0x296   : > { %2231 = vst [vmem:[#allocation2 + $0x98] sm:$0xff] %v2199_v4 }
 0x297   : > { %v2236_v0 = vld [vmem:[#allocation2 + $0xb0] sm:$0xff]  ;;  %v2237_v9 = vld [vmem:[#allocation2] sm:$0xff]  ;;  %v2238_v53 = vld [vmem:[#allocation2 + $0xd8] sm:$0xff] }
 0x298   : > { %2268 = vst [vmem:[%s3365_s5] sm:$0xff] %v2236_v0  ;;  %2269 = vst [vmem:[%s3365_s5 + $0x8] sm:$0xff] %v2237_v9  ;;  %v2239_v39 = vld [vmem:[#allocation2 + $0x18] sm:$0xff]  ;;  %v2240_v43 = vld [vmem:[#allocation2 + $0x50] sm:$0xff] }
 0x299   : > { %2270 = vst [vmem:[%s3365_s5 + $0x10] sm:$0xff] %v2238_v53  ;;  %v2241_v44 = vld [vmem:[#allocation2 + $0x68] sm:$0xff]  ;;  %2271 = vst [vmem:[%s3365_s5 + $0x18] sm:$0xff] %v2239_v39  ;;  %v2242_v45 = vld [vmem:[#allocation2 + $0x30] sm:$0xff] }
 0x29a   : > { %2272 = vst [vmem:[%s3365_s5 + $0x20] sm:$0xff] %v2240_v43  ;;  %2273 = vst [vmem:[%s3365_s5 + $0x28] sm:$0xff] %v2241_v44  ;;  %v2243_v48 = vld [vmem:[#allocation2 + $0x48] sm:$0xff]  ;;  %v2244_v25 = vld [vmem:[#allocation2 + $0x80] sm:$0xff] }
 0x29b   : > { %2274 = vst [vmem:[%s3365_s5 + $0x30] sm:$0xff] %v2242_v45  ;;  %2275 = vst [vmem:[%s3365_s5 + $0x38] sm:$0xff] %v2243_v48  ;;  %v2245_v10 = vld [vmem:[#allocation2 + $0x88] sm:$0xff]  ;;  %v2247_v17 = vld [vmem:[#allocation2 + $0xb8] sm:$0xff] }
 0x29c   : > { %2276 = vst [vmem:[%s3365_s5 + $0x40] sm:$0xff] %v2244_v25  ;;  %v2246_v46 = vld [vmem:[#allocation2 + $0xe8] sm:$0xff]  ;;  %2277 = vst [vmem:[%s3365_s5 + $0x48] sm:$0xff] %v2245_v10  ;;  %v2248_v51 = vld [vmem:[#allocation2 + $0x60] sm:$0xff] }
 0x29d   : > { %2278 = vst [vmem:[%s3365_s5 + $0x50] sm:$0xff] %v2246_v46  ;;  %2279 = vst [vmem:[%s3365_s5 + $0x58] sm:$0xff] %v2247_v17  ;;  %v2249_v1 = vld [vmem:[#allocation2 + $0xf0] sm:$0xff]  ;;  %v2250_v52 = vld [vmem:[#allocation2 + $0x8] sm:$0xff] }
 0x29e   : > { %2280 = vst [vmem:[%s3365_s5 + $0x60] sm:$0xff] %v2248_v51  ;;  %2281 = vst [vmem:[%s3365_s5 + $0x68] sm:$0xff] %v2249_v1  ;;  %v2251_v54 = vld [vmem:[#allocation2 + $0x78] sm:$0xff]  ;;  %v2254_v36 = vld [vmem:[#allocation2 + $0x40] sm:$0xff] }
 0x29f   : > { %2282 = vst [vmem:[%s3365_s5 + $0x70] sm:$0xff] %v2250_v52  ;;  %v2252_v56 = vld [vmem:[#allocation2 + $0x38] sm:$0xff]  ;;  %2283 = vst [vmem:[%s3365_s5 + $0x78] sm:$0xff] %v2251_v54  ;;  %v2255_v58 = vld [vmem:[#allocation2 + $0xc8] sm:$0xff] }
 0x2a0   : > { %v2253_v18 = vld [vmem:[#allocation2 + $0x58] sm:$0xff]  ;;  %2284 = vst [vmem:[%s3365_s5 + $0x80] sm:$0xff] %v2252_v56  ;;  %v2256_v60 = vld [vmem:[#allocation2 + $0xe0] sm:$0xff]  ;;  %2286 = vst [vmem:[%s3365_s5 + $0x90] sm:$0xff] %v2254_v36 }
 0x2a1   : > { %2285 = vst [vmem:[%s3365_s5 + $0x88] sm:$0xff] %v2253_v18  ;;  %2287 = vst [vmem:[%s3365_s5 + $0x98] sm:$0xff] %v2255_v58  ;;  %v2257_v59 = vld [vmem:[#allocation2 + $0x90] sm:$0xff]  ;;  %v2259_v62 = vld [vmem:[#allocation2 + $0xc0] sm:$0xff] }
 0x2a2   : > { %2288 = vst [vmem:[%s3365_s5 + $0xa0] sm:$0xff] %v2256_v60  ;;  %v2258_v24 = vld [vmem:[#allocation2 + $0x70] sm:$0xff]  ;;  %2289 = vst [vmem:[%s3365_s5 + $0xa8] sm:$0xff] %v2257_v59  ;;  %v2260_v7 = vld [vmem:[#allocation2 + $0xa8] sm:$0xff] }
 0x2a3   : > { %2290 = vst [vmem:[%s3365_s5 + $0xb0] sm:$0xff] %v2258_v24  ;;  %2291 = vst [vmem:[%s3365_s5 + $0xb8] sm:$0xff] %v2259_v62  ;;  %v2261_v29 = vld [vmem:[#allocation2 + $0xd0] sm:$0xff]  ;;  %v2263_v42 = vld [vmem:[#allocation2 + $0x28] sm:$0xff] }
 0x2a4   : > { %v2262_v63 = vld [vmem:[#allocation2 + $0x10] sm:$0xff]  ;;  %2292 = vst [vmem:[%s3365_s5 + $0xc0] sm:$0xff] %v2260_v7  ;;  %2293 = vst [vmem:[%s3365_s5 + $0xc8] sm:$0xff] %v2261_v29  ;;  %v2264_v2 = vld [vmem:[#allocation2 + $0xa0] sm:$0xff] }
 0x2a5   : > { %2294 = vst [vmem:[%s3365_s5 + $0xd0] sm:$0xff] %v2262_v63  ;;  %v2265_v5 = vld [vmem:[#allocation2 + $0xf8] sm:$0xff]  ;;  %2295 = vst [vmem:[%s3365_s5 + $0xd8] sm:$0xff] %v2263_v42  ;;  %v2266_v3 = vld [vmem:[#allocation2 + $0x20] sm:$0xff] }
 0x2a6   : > { %2296 = vst [vmem:[%s3365_s5 + $0xe0] sm:$0xff] %v2264_v2  ;;  %2297 = vst [vmem:[%s3365_s5 + $0xe8] sm:$0xff] %v2265_v5  ;;  %v2267_v6 = vld [vmem:[#allocation2 + $0x98] sm:$0xff] }
 0x2a7   : > { %2298 = vst [vmem:[%s3365_s5 + $0xf0] sm:$0xff] %v2266_v3  ;;  %2299 = vst [vmem:[%s3365_s5 + $0xf8] sm:$0xff] %v2267_v6 }
 0x2a8 PF: > { %s3839_s21 = sld [smem:[#allocation15_spill]]  ;;  %s2316_s11 = sshll.u32 %s3365_s5, 4  ;;  %s3712_s11 = int_to_ptr.vmem [resolvable:$true] %s2316_s11 }
 0x2a9   : > { %s3840_s18 = sld [smem:[#allocation23_spill]]  ;;  %s2301_s6 = scalar_lea.sflag [#allocation5], %s3357_s15 }
 0x2aa   : > { %s2895_s30 = scalar_lea.vmem %s3712_s11, 4096  ;;  %p3842_p10 = scmp.ne.s32.totalorder %s3832_s8, 0 }
 0x2ab   : > { %p2896_p13 = scmp.ne.s32.totalorder %s3712_s11, %s2895_s30  ;;  %s3055_s9 = smov [#allocation9]  }
 0x2ac   : > { %s2899_s22 = sshll.u32 %s3055_s9, 4  ;;  %s2900_s22 = int_to_ptr.vmem [resolvable:$false] %s2899_s22 }
 0x2ad   : > { %p2897_p1 = pnand %p2896_p13, %p3842_p10  ;;  %s2901_s27 = scalar_lea.vmem %s2900_s22, 8192 }
 0x2ae   : > { %s2664_s23 = sshll.u32 %s3839_s21, 7  ;;  %p2902_p7 = scmp.lt.s32.totalorder %s3712_s11, %s2900_s22 }
 0x2af   : > { %s3841_s4 = smov %s3840_s18  ;;  %s3709_s24 = scalar_lea.hbm %s3840_s18, %s2664_s23 }
 0x2b0   : > { %p2898_p12 = pneg %p2897_p1  ;;  %p2903_p5 = scmp.lt.s32.totalorder %s2901_s27, %s2895_s30 }
 0x2b2   : > { %p2904_p2 = por %p2903_p5, %p2902_p7 }
 0x2b4   : > { %p2905_p11 = pnand %p2904_p2, %p2898_p12 }
 0x2b6   : > { %2908 = shalt.err (!%p2905_p11)
}
 0x2b7   : > { %s2909_s1 = scalar_lea.hbm %s3709_s24, 4096  ;;  %s2913_s28 = scalar_lea.hbm %s3841_s4, 12288 }
 0x2b8   : > { %p2910_p3 = scmp.ne.s32.totalorder %s3709_s24, %s2909_s1  ;;  %p2914_p4 = scmp.lt.s32.totalorder %s3709_s24, %s3841_s4 }
 0x2b9   : > { %p2915_p9 = scmp.lt.s32.totalorder %s2913_s28, %s2909_s1 }
 0x2ba   : > { %p2911_p6 = pnand %p2910_p3, %p3842_p10 }
 0x2bb   : > { %p2916_p0 = por %p2915_p9, %p2914_p4 }
 0x2bc   : > { %p2912_p8 = pneg %p2911_p6 }
 0x2be   : > { %p2917_p13 = pnand %p2916_p0, %p2912_p8 }
 0x2c0   : > { %2920 = shalt.err (!%p2917_p13)
}
 0x2c1   : > { %s3056_s3 = smov 128   ;;  %s3057_s0 = smov 384  }
 0x2c2   : > { %s3058_s18 = smov 8  }
 0x2c3   : > { %2675 = dma.vmem_to_hbm [thread:$0]  (%p3842_p10), %s3712_s11, 4096, %s3709_s24, %s2301_s6, %s3056_s3, %s3057_s0, %s3058_s18  }
 0x2c4 PF: > { %p2692_p1 = scmp.ge.s32.totalorder %s3047_s25, 2  ;;  %s2331_s30 = sand.u32 1, %s2995_s12  }
 0x2c5   : > { %p3843_p12 = scmp.ne.s32.totalorder %s3833_s7, 0  ;;  %s2332_s9 = scalar_lea.sflag [#allocation5], %s2331_s30 }
 0x2c7   : > { %p2688_p7 = pnand %p2692_p1, %p3843_p12 }
 0x2c9   : > { %p2689_p5 = pneg %p2688_p7 }
 0x2cb   : > { %2990 = dma.done.wait (%p2689_p5), %s2332_s9, 4096  }
 0x2cc   : > { %2992 = vsyncadd (%p2689_p5), %s2332_s9, 4294963200  ;;  %s22_s25 = sadd.s32 1, %s3047_s25   ;;  %s3845_s8 = sld [smem:[#allocation19_spill]] }
 0x2cd   : > { %p3742_p2 = scmp.ge.s32.totalorder %s22_s25, 8   ;;  %s3846_s21 = sld [smem:[#allocation16_spill]] }
 0x2ce   : > { %s3847_s7 = sld [smem:[#allocation17_spill]]  ;;  %s3851_s12 = smov %s2999_s13 }
 0x2cf   : > { %s3848_s23 = sld [smem:[#allocation18_spill]]  ;;  %s3852_s13 = smov %s3003_s14 }
 0x2d0   : > { %s3849_s24 = sld [smem:[#allocation20_spill]]  ;;  %s3853_s14 = smov %s3300_s29 }
 0x2d1   : > { %s3854_s15 = smov %s3011_s16  ;;  %s3855_s16 = smov %s3015_s17 }
 0x2d2   : > { %s3856_s17 = smov %s3305_s26  ;;  %s3857_s18 = smov %s3023_s19 }
 0x2d3   : > { %s3858_s19 = smov %s3027_s20  ;;  %s3859_s20 = smov %s3845_s8 }
 0x2d4   : > { %s3860_s22 = smov %s3847_s7  ;;  %21 = sbr.rel (!%p3742_p2) target bundleno = 16 (0x10), region = 109 }
 0x2d9   :  { %2337 = vsyncpa [#allocation4], 1 }
 0x2da   :  { %2339 = vsyncpa [#allocation4 + $0x1], 1 }
 0x2db   :  { %2340 = vsyncpa [#allocation7], 1 }
 0x2dc   :  { %2342 = vsyncpa [#allocation7 + $0x1], 1 }
 0x2dd   :  { %2343 = vsyncpa [#allocation5], 1 }
 0x2de   :  { %2345 = vsyncpa [#allocation5 + $0x1], 1 }

</bundles_post_ra>
